<compile_context>
chip_gen: v7x
topology: tpu7x:2x2x1
jax: 0.10.0
libtpu: 0.0.40
codegen_flags: <defaults>
</compile_context>

<pallas_src>
import functools

import jax
import jax.numpy as jnp
from jax.experimental import pallas as pl
from jax.experimental.pallas import tpu as pltpu

EPS = 2.220446049250313e-16  # np.finfo(float).eps


def _round_up(x, m):
    return (x + m - 1) // m * m


def _tpu_budgets():
    """(vmem_limit_bytes, per-call resident-tile budget) per TPU generation."""
    try:
        kind = jax.devices()[0].device_kind.lower()
    except Exception:  # pragma: no cover
        kind = ""
    if "v7" in kind:
        return 48 * 1024 * 1024, 24 * 1024 * 1024    # 64 MiB physical / TC
    if ("v4" in kind) or ("v5" in kind) or ("v6" in kind):
        return 100 * 1024 * 1024, 48 * 1024 * 1024   # 128 MiB physical
    return 48 * 1024 * 1024, 24 * 1024 * 1024        # unknown backend: be safe


_VMEM_LIMIT, _TILE_BUDGET = _tpu_budgets()


# ----------------------------------------------------------------------------
# Row-tile selection (VMEM-padded estimate + minimum-grid-step target)
# ----------------------------------------------------------------------------
def _pick_row_tiles(N, H, Wp, p, ops, cout_p, out_itemsize, budget,
                    min_steps=4):
    """Split the H output rows into T tiles of TH rows.

    ops: per-operand (K_i, cin_i, fold_i).  Sizes use VMEM padding rules:
    lane dims round up to 128, bf16 sublane dims to 16.
    """

    def est(TH):
        M = TH * Wp
        win = (TH + 2 * p) * Wp + 2 * p
        total = 0
        lhs_max = 0
        for (K_i, ci, fold) in ops:
            # double-buffered bf16 input window (1, 1, win, ci)
            total += 2 * _round_up(win, 16) * _round_up(ci, 128) * 2
            # resident bf16 weights (double-buffered by the pipeline)
            if fold:
                total += 2 * K_i * _round_up(K_i * ci, 16) * cout_p * 2
                lhs_max = max(lhs_max, M * _round_up(K_i * ci, 128) * 2)
            else:
                total += 2 * (K_i * K_i) * _round_up(ci, 16) * cout_p * 2
                lhs_max = max(lhs_max, M * _round_up(ci, 128) * 2)
        total += 2 * _round_up(M, 16) * cout_p * out_itemsize  # output tile
        total += _round_up(M, 8) * cout_p * 4                  # f32 accumulator
        total += lhs_max                                        # folded lhs temp
        return total

    cands = []
    for T in range(1, H + 1):
        if H % T:
            continue
        TH = H // T
        if T > 1 and (TH * Wp) % 8:
            continue  # keep the output block sublane-aligned
        cands.append((T, TH))
    fit = [c for c in cands if est(c[1]) <= budget]
    if not fit:
        return cands[-1]  # most-split valid config (last resort)
    cap = max(4 * fit[0][0], 8)  # never over-split just to add grid steps
    for target in (min_steps, 2):
        for (T, TH) in fit:
            if N * T >= target and T <= cap:
                return (T, TH)
    return fit[0]


# ----------------------------------------------------------------------------
# Pallas conv kernel: same-padding KxK conv, stride 1, fused bias (+ ReLU)
# ----------------------------------------------------------------------------
def conv2d_pallas(xs, ws, b, relu, out_dtype=jnp.bfloat16, row_tiles=None):
    """Multi-operand 'same' stride-1 convolution with fused bias (+ReLU).

    xs[i]: (N, H, W, Cin_i);  ws[i]: (K_i, K_i, Cin_i, Cout).  The operand
    contributions are summed, which equals convolving the channel-concatenated
    input (used to avoid the 128+pts_num concat of CPM stages 2/3).  Operands
    may have different K_i (smaller kernels are centre-aligned), which lets a
    glue-im2col'ed operand enter as a K=1 deep dot.
    Returns (N, H, W, Cout) in out_dtype.
    """
    N, H, W, _ = map(int, xs[0].shape)
    Cout = int(ws[0].shape[3])
    Ks = [int(w.shape[0]) for w in ws]
    cins = [int(x.shape[-1]) for x in xs]
    assert all(int(w.shape[3]) == Cout for w in ws)
    assert all(int(w.shape[2]) == ci for w, ci in zip(ws, cins))
    # fold kw taps into one deep dot when the lane concat is cheap / trivial
    folds = [(k == 1) or (ci >= 64) for k, ci in zip(Ks, cins)]
    p = max((k - 1) // 2 for k in Ks)
    Hp, Wp = H + 2 * p, W + 2 * p
    Cout_p = _round_up(Cout, 128)   # lane-dense output head
    out_itemsize = jnp.dtype(out_dtype).itemsize

    ops = list(zip(Ks, cins, folds))
    if row_tiles is None:
        T, TH = _pick_row_tiles(N, H, Wp, p, ops, Cout_p, out_itemsize,
                                _TILE_BUDGET)
    else:
        T = int(row_tiles)
        assert H % T == 0
        TH = H // T
        assert T == 1 or (TH * Wp) % 8 == 0
    M = TH * Wp                      # output rows per tile (padded-width grid)
    win = (TH + 2 * p) * Wp + 2 * p  # flat input rows needed per tile

    # ---- glue: pad once, flatten; gather per-tile row windows when T > 1 ----
    x_ops, w_ops = [], []
    for x, w, k, ci, fold in zip(xs, ws, Ks, cins, folds):
        xp = x.astype(jnp.bfloat16)
        if p:
            xp = jnp.pad(xp, ((0, 0), (p, p), (p, p), (0, 0)))
        flat = xp.reshape(N, Hp * Wp, ci)
        if p:
            flat = jnp.pad(flat, ((0, 0), (0, 2 * p), (0, 0)))
        if T == 1:
            wins = flat[:, None, :, :]                        # (N, 1, L, ci)
        else:
            # overlapping row windows (2p-row halo); small duplication only
            idx = (jnp.arange(T) * (TH * Wp))[:, None] + jnp.arange(win)[None, :]
            wins = flat[:, idx, :]                            # (N, T, win, ci)
        x_ops.append(wins)
        wb = w.astype(jnp.bfloat16)
        if fold:
            wk = wb.reshape(k, k * ci, Cout)      # per-kh, kw-folded taps
        else:
            wk = wb.reshape(k * k, ci, Cout)      # per-tap
        if Cout_p != Cout:
            wk = jnp.pad(wk, ((0, 0), (0, 0), (0, Cout_p - Cout)))
        w_ops.append(wk)
    bp = b.astype(jnp.float32).reshape(1, Cout)
    if Cout_p != Cout:
        bp = jnp.pad(bp, ((0, 0), (0, Cout_p - Cout)))

    P = len(xs)

    # ---- kernel: kw-folded deep dots, f32 accumulation, fused bias/ReLU -----
    def kernel(*refs):
        x_refs = refs[:P]
        w_refs = refs[P:2 * P]
        b_ref = refs[2 * P]
        o_ref = refs[2 * P + 1]
        acc = jnp.zeros((M, Cout_p), jnp.float32)
        for i in range(P):
            k = Ks[i]
            d = p - (k - 1) // 2       # centre-align smaller kernels
            if folds[i]:
                for kh in range(k):
                    base = (kh + d) * Wp + d
                    parts = [x_refs[i][0, 0, base + kw:base + kw + M, :]
                             for kw in range(k)]
                    lhs = parts[0] if k == 1 else jnp.concatenate(parts, axis=-1)
                    acc = acc + jnp.dot(lhs, w_refs[i][kh],
                                        preferred_element_type=jnp.float32)
            else:
                for kh in range(k):
                    for kw in range(k):
                        off = (kh + d) * Wp + (kw + d)
                        acc = acc + jnp.dot(x_refs[i][0, 0, off:off + M, :],
                                            w_refs[i][kh * k + kw],
                                            preferred_element_type=jnp.float32)
        out = acc + b_ref[...]
        if relu:
            out = jnp.maximum(out, 0.0)
        o_ref[0] = out.astype(o_ref.dtype)

    in_specs = []
    for i in range(P):
        in_specs.append(pl.BlockSpec((1, 1, win, cins[i]),
                                     lambda n, t: (n, t, 0, 0)))
    for i in range(P):
        # all weight taps resident in VMEM (constant index map)
        in_specs.append(pl.BlockSpec(tuple(w_ops[i].shape),
                                     lambda n, t: (0, 0, 0)))
    in_specs.append(pl.BlockSpec((1, Cout_p), lambda n, t: (0, 0)))

    out = pl.pallas_call(
        kernel,
        out_shape=jax.ShapeDtypeStruct((N, T * M, Cout_p), out_dtype),
        grid=(N, T),
        in_specs=in_specs,
        out_specs=pl.BlockSpec((1, M, Cout_p), lambda n, t: (n, t, 0)),
        compiler_params=pltpu.CompilerParams(
            dimension_semantics=("parallel", "parallel"),
            vmem_limit_bytes=_VMEM_LIMIT),
    )(*x_ops, *w_ops, bp)

    # drop padded-width garbage columns / lane padding; XLA fuses this slice
    # with the next layer's pooling / pad / cast glue.
    out = out.reshape(N, H, Wp, Cout_p)
    if p:
        out = out[:, :, :W, :]
    if Cout_p != Cout:
        out = out[..., :Cout]
    return out


# ----------------------------------------------------------------------------
# Glue helpers (plain JAX between pallas calls; XLA fuses them)
# ----------------------------------------------------------------------------
def im2col_nhwc(x, k):
    """K*K tap im2col with 'same' padding: (N,H,W,C) -> (N,H,W,K*K*C).

    Channel order is (kh, kw, c), matching w.reshape(1, 1, K*K*C, Cout).
    """
    N, H, W, C = x.shape
    p = (k - 1) // 2
    xp = jnp.pad(x, ((0, 0), (p, p), (p, p), (0, 0)))
    cols = [xp[:, kh:kh + H, kw:kw + W, :] for kh in range(k) for kw in range(k)]
    return jnp.concatenate(cols, axis=-1)


def _maxpool2x2(x):
    # TODO(synk): fold the 2x2 maxpool into the preceding conv kernel's
    # epilogue; for now it is plain JAX so XLA fuses it with the adjacent
    # layout glue (one HBM round trip per pool boundary).
    N, H, W, C = x.shape
    x = x[:, :2 * (H // 2), :2 * (W // 2), :]
    return jnp.max(x.reshape(N, H // 2, 2, W // 2, 2, C), axis=(2, 4))


# ----------------------------------------------------------------------------
# find_tensor_peak_batch
# TODO(synk): the tiny data-dependent argmax-centered window gather
# (F.affine_grid/F.grid_sample landing on integer pixels) stays in plain JAX.
# ----------------------------------------------------------------------------
def find_tensor_peak_batch(heatmap, radius, downsample, threshold=1e-6):
    # heatmap: (num_pts, H, W) float32
    P, H, W = heatmap.shape
    flat = heatmap.reshape(P, -1)
    score = jnp.max(flat, axis=1)
    index = jnp.argmax(flat, axis=1)
    index_w = (index % W).astype(jnp.float32)
    index_h = (index // W).astype(jnp.float32)  # legacy integer division

    r = radius
    hp = jnp.pad(heatmap, ((0, 0), (r, r), (r, r)))
    ih = (index // W).astype(jnp.int32)
    iw = (index % W).astype(jnp.int32)

    def extract(hm_p, ihh, iww):
        return jax.lax.dynamic_slice(hm_p, (ihh, iww), (2 * r + 1, 2 * r + 1))

    sub = jax.vmap(extract)(hp, ih, iw)                      # (P, 2r+1, 2r+1)
    sub = jnp.where(sub > threshold, sub, jnp.float32(EPS))  # F.threshold

    X = jnp.arange(-r, r + 1, dtype=jnp.float32).reshape(1, 1, 2 * r + 1)
    Y = jnp.arange(-r, r + 1, dtype=jnp.float32).reshape(1, 2 * r + 1, 1)
    sum_region = jnp.sum(sub.reshape(P, -1), axis=1)
    x = jnp.sum((sub * X).reshape(P, -1), axis=1) / sum_region + index_w
    y = jnp.sum((sub * Y).reshape(P, -1), axis=1) / sum_region + index_h
    x = x * downsample + downsample / 2.0 - 0.5
    y = y * downsample + downsample / 2.0 - 0.5
    return jnp.stack([x, y], axis=1), score


# ----------------------------------------------------------------------------
# Parameter construction (deterministic, He-style init)
# ----------------------------------------------------------------------------
def _init_conv(key, k, cin, cout):
    w = jax.random.normal(key, (k, k, cin, cout), jnp.float32)
    w = w * jnp.sqrt(2.0 / (k * k * cin))
    b = jnp.zeros((cout,), jnp.float32)
    return (w, b)


def build_params(key, pts_num):
    feat_cfg = [(3, 3, 64), (3, 64, 64), "pool",
                (3, 64, 128), (3, 128, 128), "pool",
                (3, 128, 256), (3, 256, 256), (3, 256, 256), "pool",
                (3, 256, 512), (3, 512, 512), (3, 512, 512)]
    cpm_cfg = [(3, 512, 256), (3, 256, 128)]
    stage1_cfg = [(3, 128, 128, True)] * 4 + \
                 [(1, 128, 512, True), (1, 512, pts_num, False)]
    stagex_cfg = [(7, 128 + pts_num, 128, True)] + [(7, 128, 128, True)] * 2 + \
                 [(3, 128, 128, True)] * 4 + \
                 [(1, 128, 128, True), (1, 128, pts_num, False)]

    n_convs = sum(1 for c in feat_cfg if c != "pool") + len(cpm_cfg) \
        + len(stage1_cfg) + 2 * len(stagex_cfg)
    keys = iter(jax.random.split(key, n_convs))

    features = []
    for c in feat_cfg:
        if c == "pool":
            features.append(("pool",))
        else:
            k, cin, cout = c
            w, b = _init_conv(next(keys), k, cin, cout)
            features.append(("conv", w, b, True))

    cpm_feature = []
    for k, cin, cout in cpm_cfg:
        w, b = _init_conv(next(keys), k, cin, cout)
        cpm_feature.append((w, b, True))

    stages = []
    for cfg in [stage1_cfg, stagex_cfg, stagex_cfg]:
        layers = []
        for k, cin, cout, relu in cfg:
            w, b = _init_conv(next(keys), k, cin, cout)
            layers.append((w, b, relu))
        stages.append(layers)

    return {"features": features, "cpm": cpm_feature, "stages": stages}


# ----------------------------------------------------------------------------
# Forward pass (mirrors VGG16_base.forward)
# ----------------------------------------------------------------------------
def vgg16_base_forward(params, inputs_nchw, downsample=8):
    assert inputs_nchw.ndim == 4
    x = jnp.transpose(inputs_nchw, (0, 2, 3, 1)).astype(jnp.float32)  # NHWC

    first = True
    for item in params["features"]:
        if item[0] == "pool":
            x = _maxpool2x2(x)
        else:
            _, w, b, relu = item
            if first:
                # Cin=3: K*K glue im2col -> one deep dot instead of 9 depth-3 dots
                k = int(w.shape[0])
                cin = int(w.shape[2])
                x = conv2d_pallas([im2col_nhwc(x, k)],
                                  [w.reshape(1, 1, k * k * cin, w.shape[3])],
                                  b, relu)
                first = False
            else:
                x = conv2d_pallas([x], [w], b, relu)

    for (w, b, relu) in params["cpm"]:
        x = conv2d_pallas([x], [w], b, relu)
    xfeature = x  # (N, h, w, 128), bf16

    batch_cpms_nhwc = []
    for i in range(3):
        layers = params["stages"][i]
        if i == 0:
            cur = xfeature
            start = 0
        else:
            # conv(cat([xfeature, prev])) == conv(xf, w[:, :, :128]) +
            # conv(prev, w[:, :, 128:]) + bias.  The pts_num branch is glue
            # im2col'ed into one deep K=1 dot (no 49 shallow MXU passes).
            w0, b0, relu0 = layers[0]
            k0 = int(w0.shape[0])
            c_hm = int(w0.shape[2]) - 128
            prev = batch_cpms_nhwc[i - 1]
            w_hm = w0[:, :, 128:, :].reshape(1, 1, k0 * k0 * c_hm, w0.shape[3])
            cur = conv2d_pallas([xfeature, im2col_nhwc(prev, k0)],
                                [w0[:, :, :128, :], w_hm],
                                b0, relu0)
            start = 1
        n_layers = len(layers)
        for j in range(start, n_layers):
            w, b, relu = layers[j]
            out_dtype = jnp.float32 if j == n_layers - 1 else jnp.bfloat16
            cur = conv2d_pallas([cur], [w], b, relu, out_dtype=out_dtype)
        batch_cpms_nhwc.append(cur)

    # back to NCHW to match PyTorch outputs
    batch_cpms = [jnp.transpose(c, (0, 3, 1, 2)) for c in batch_cpms_nhwc]

    peak_fn = lambda hm: find_tensor_peak_batch(hm, 4, downsample)
    batch_locs, batch_scos = jax.vmap(peak_fn)(batch_cpms[-1])
    return batch_cpms, batch_locs, batch_scos


# ----------------------------------------------------------------------------
# Pure-JAX reference (same bf16 quantization points) for end-to-end validation
# ----------------------------------------------------------------------------
def _conv_ref(x, w, b, relu):
    xb = x.astype(jnp.bfloat16).astype(jnp.float32)
    wb = w.astype(jnp.bfloat16).astype(jnp.float32)
    y = jax.lax.conv_general_dilated(
        xb, wb, (1, 1), "SAME",
        dimension_numbers=("NHWC", "HWIO", "NHWC"),
        precision=jax.lax.Precision.HIGHEST)
    y = y + b.astype(jnp.float32)[None, None, None, :]
    return jnp.maximum(y, 0.0) if relu else y


def vgg16_base_ref_cpms(params, inputs_nchw):
    x = jnp.transpose(inputs_nchw, (0, 2, 3, 1)).astype(jnp.float32)
    for item in params["features"]:
        if item[0] == "pool":
            x = _maxpool2x2(x)
        else:
            _, w, b, relu = item
            x = _conv_ref(x, w, b, relu).astype(jnp.bfloat16).astype(jnp.float32)
    for (w, b, relu) in params["cpm"]:
        x = _conv_ref(x, w, b, relu).astype(jnp.bfloat16).astype(jnp.float32)
    xfeature = x
    cpms = []
    for i in range(3):
        layers = params["stages"][i]
        cur = xfeature if i == 0 else jnp.concatenate(
            [xfeature, cpms[i - 1]], axis=-1)
        n_layers = len(layers)
        for j, (w, b, relu) in enumerate(layers):
            cur = _conv_ref(cur, w, b, relu)
            if j != n_layers - 1:
                cur = cur.astype(jnp.bfloat16).astype(jnp.float32)
        cpms.append(cur)
    return [jnp.transpose(c, (0, 3, 1, 2)) for c in cpms]


# ----------------------------------------------------------------------------
if __name__ == "__main__":
    pts_num = 4
    root = jax.random.PRNGKey(0)
    k_params, k_input, kc1, kc2, kc3, kc4, kc5, kc6, kc7 = jax.random.split(root, 9)

    # --- standalone conv-kernel checks ---------------------------------------
    # (a) kw-folded 3x3 path (Cin=64, Cout lane-padded 64->128), plus tiled run
    cx = jax.random.normal(kc1, (2, 16, 16, 64), jnp.float32)
    cw = jax.random.normal(kc2, (3, 3, 64, 64), jnp.float32) * 0.1
    cb = jnp.linspace(-1.0, 1.0, 64, dtype=jnp.float32)
    ref_a = _conv_ref(cx, cw, cb, True)
    got_a = conv2d_pallas([cx], [cw], cb, True, out_dtype=jnp.float32)
    got_a_t = conv2d_pallas([cx], [cw], cb, True, out_dtype=jnp.float32,
                            row_tiles=4)
    assert bool(jnp.allclose(got_a, ref_a, rtol=2e-2, atol=2e-2))
    assert bool(jnp.allclose(got_a_t, got_a, rtol=1e-4, atol=1e-4))

    # (b) per-tap fallback path (Cin=8)
    sx = jax.random.normal(kc3, (2, 8, 8, 8), jnp.float32)
    sw = jax.random.normal(kc4, (3, 3, 8, 16), jnp.float32) * 0.2
    sb = jnp.zeros((16,), jnp.float32)
    got_b = conv2d_pallas([sx], [sw], sb, False, out_dtype=jnp.float32)
    assert bool(jnp.allclose(got_b, _conv_ref(sx, sw, sb, False),
                             rtol=2e-2, atol=2e-2))

    # (c) two-operand stage-entry path: 7x7 xfeature branch + im2col heatmap
    xf = jax.random.normal(kc5, (2, 8, 8, 128), jnp.float32) * 0.1
    hm = jax.random.normal(kc6, (2, 8, 8, pts_num), jnp.float32)
    w7 = jax.random.normal(kc7, (7, 7, 128 + pts_num, 32), jnp.float32) * 0.02
    b7 = jnp.linspace(-0.5, 0.5, 32, dtype=jnp.float32)
    ref_c = _conv_ref(jnp.concatenate([xf, hm], axis=-1), w7, b7, True)
    w_hm = w7[:, :, 128:, :].reshape(1, 1, 49 * pts_num, 32)
    got_c = conv2d_pallas([xf, im2col_nhwc(hm, 7)],
                          [w7[:, :, :128, :], w_hm], b7, True,
                          out_dtype=jnp.float32)
    assert bool(jnp.allclose(got_c, ref_c, rtol=2e-2, atol=2e-2))

    # --- full CPM-VGG16 forward ----------------------------------------------
    params = build_params(k_params, pts_num)
    x = jax.random.normal(k_input, (2, 3, 32, 32), jnp.float32)  # NCHW

    fwd = jax.jit(functools.partial(vgg16_base_forward, params))
    cpms, locs, scos = fwd(x)
    jax.block_until_ready((cpms, locs, scos))

    # shapes (32/8 = 4 spatial heatmap)
    assert all(c.shape == (2, pts_num, 4, 4) for c in cpms)
    assert locs.shape == (2, pts_num, 2)
    assert scos.shape == (2, pts_num)

    # end-to-end numeric check vs. a pure-JAX reference with matching bf16 casts
    ref_cpms = jax.jit(functools.partial(vgg16_base_ref_cpms, params))(x)
    for c, r in zip(cpms, ref_cpms):
        assert bool(jnp.allclose(c, r, rtol=5e-2, atol=5e-2))

    print("KERNEL_OK")
</pallas_src>

<mosaic_0001>
module attributes {stable_mosaic.version = 11 : i64} {
  func.func @kernel(%arg0: i32, %arg1: i32, %arg2: memref<1x1x182x64xbf16, #tpu.memory_space<vmem>>, %arg3: memref<3x192x128xbf16, #tpu.memory_space<vmem>>, %arg4: memref<1x128xf32, #tpu.memory_space<vmem>>, %arg5: memref<1x144x128xf32, #tpu.memory_space<vmem>>) attributes {dimension_semantics = [#tpu.dimension_semantics<parallel>, #tpu.dimension_semantics<parallel>], iteration_bounds = array<i64: 2, 2>, scalar_prefetch = 0 : i64, scratch_operands = 0 : i64, tpu.core_type = #tpu.core_type<tc>, window_params = [{transform_indices = @transform_0, window_bounds = array<i64: 1, 1, 182, 64>}, {pipeline_mode = #tpu.pipeline_mode<synchronous>, transform_indices = @transform_1, window_bounds = array<i64: 3, 192, 128>}, {pipeline_mode = #tpu.pipeline_mode<synchronous>, transform_indices = @transform_2, window_bounds = array<i64: 1, 128>}, {transform_indices = @transform_3, window_bounds = array<i64: 1, 144, 128>}]} {
    %cst = arith.constant 0.000000e+00 : f32
    %0 = vector.broadcast %cst : f32 to vector<144x128xf32>
    %c0 = arith.constant 0 : index
    %c0_0 = arith.constant 0 : index
    %c0_1 = arith.constant 0 : index
    %c0_2 = arith.constant 0 : index
    %1 = vector.load %arg2[%c0, %c0_0, %c0_1, %c0_2] : memref<1x1x182x64xbf16, #tpu.memory_space<vmem>>, vector<1x1x144x64xbf16>
    %2 = vector.shape_cast %1 : vector<1x1x144x64xbf16> to vector<144x64xbf16>
    %c0_3 = arith.constant 0 : index
    %c0_4 = arith.constant 0 : index
    %c1 = arith.constant 1 : index
    %c0_5 = arith.constant 0 : index
    %3 = vector.load %arg2[%c0_3, %c0_4, %c1, %c0_5] : memref<1x1x182x64xbf16, #tpu.memory_space<vmem>>, vector<1x1x144x64xbf16>
    %4 = vector.shape_cast %3 : vector<1x1x144x64xbf16> to vector<144x64xbf16>
    %c0_6 = arith.constant 0 : index
    %c0_7 = arith.constant 0 : index
    %c2 = arith.constant 2 : index
    %c0_8 = arith.constant 0 : index
    %5 = vector.load %arg2[%c0_6, %c0_7, %c2, %c0_8] : memref<1x1x182x64xbf16, #tpu.memory_space<vmem>>, vector<1x1x144x64xbf16>
    %6 = vector.shape_cast %5 : vector<1x1x144x64xbf16> to vector<144x64xbf16>
    %7 = tpu.concatenate %2, %4, %6 in 1 : vector<144x64xbf16>, vector<144x64xbf16>, vector<144x64xbf16> -> vector<144x192xbf16>
    %c0_9 = arith.constant 0 : index
    %c0_10 = arith.constant 0 : index
    %c0_11 = arith.constant 0 : index
    %8 = vector.load %arg3[%c0_9, %c0_10, %c0_11] : memref<3x192x128xbf16, #tpu.memory_space<vmem>>, vector<1x192x128xbf16>
    %9 = vector.shape_cast %8 : vector<1x192x128xbf16> to vector<192x128xbf16>
    %cst_12 = arith.constant dense<0.000000e+00> : vector<144x128xf32>
    %10 = tpu.matmul %7, %9, %cst_12 {dimension_numbers = #tpu.dot_dimension_numbers<[1], [0], [0], [1], [0, 0, 1, 1], [], []>} : vector<144x192xbf16>, vector<192x128xbf16>, vector<144x128xf32> -> vector<144x128xf32>
    %11 = arith.addf %0, %10 : vector<144x128xf32>
    %c0_13 = arith.constant 0 : index
    %c0_14 = arith.constant 0 : index
    %c18 = arith.constant 18 : index
    %c0_15 = arith.constant 0 : index
    %12 = vector.load %arg2[%c0_13, %c0_14, %c18, %c0_15] : memref<1x1x182x64xbf16, #tpu.memory_space<vmem>>, vector<1x1x144x64xbf16>
    %13 = vector.shape_cast %12 : vector<1x1x144x64xbf16> to vector<144x64xbf16>
    %c0_16 = arith.constant 0 : index
    %c0_17 = arith.constant 0 : index
    %c19 = arith.constant 19 : index
    %c0_18 = arith.constant 0 : index
    %14 = vector.load %arg2[%c0_16, %c0_17, %c19, %c0_18] : memref<1x1x182x64xbf16, #tpu.memory_space<vmem>>, vector<1x1x144x64xbf16>
    %15 = vector.shape_cast %14 : vector<1x1x144x64xbf16> to vector<144x64xbf16>
    %c0_19 = arith.constant 0 : index
    %c0_20 = arith.constant 0 : index
    %c20 = arith.constant 20 : index
    %c0_21 = arith.constant 0 : index
    %16 = vector.load %arg2[%c0_19, %c0_20, %c20, %c0_21] : memref<1x1x182x64xbf16, #tpu.memory_space<vmem>>, vector<1x1x144x64xbf16>
    %17 = vector.shape_cast %16 : vector<1x1x144x64xbf16> to vector<144x64xbf16>
    %18 = tpu.concatenate %13, %15, %17 in 1 : vector<144x64xbf16>, vector<144x64xbf16>, vector<144x64xbf16> -> vector<144x192xbf16>
    %c1_22 = arith.constant 1 : index
    %c0_23 = arith.constant 0 : index
    %c0_24 = arith.constant 0 : index
    %19 = vector.load %arg3[%c1_22, %c0_23, %c0_24] : memref<3x192x128xbf16, #tpu.memory_space<vmem>>, vector<1x192x128xbf16>
    %20 = vector.shape_cast %19 : vector<1x192x128xbf16> to vector<192x128xbf16>
    %cst_25 = arith.constant dense<0.000000e+00> : vector<144x128xf32>
    %21 = tpu.matmul %18, %20, %cst_25 {dimension_numbers = #tpu.dot_dimension_numbers<[1], [0], [0], [1], [0, 0, 1, 1], [], []>} : vector<144x192xbf16>, vector<192x128xbf16>, vector<144x128xf32> -> vector<144x128xf32>
    %22 = arith.addf %11, %21 : vector<144x128xf32>
    %c0_26 = arith.constant 0 : index
    %c0_27 = arith.constant 0 : index
    %c36 = arith.constant 36 : index
    %c0_28 = arith.constant 0 : index
    %23 = vector.load %arg2[%c0_26, %c0_27, %c36, %c0_28] : memref<1x1x182x64xbf16, #tpu.memory_space<vmem>>, vector<1x1x144x64xbf16>
    %24 = vector.shape_cast %23 : vector<1x1x144x64xbf16> to vector<144x64xbf16>
    %c0_29 = arith.constant 0 : index
    %c0_30 = arith.constant 0 : index
    %c37 = arith.constant 37 : index
    %c0_31 = arith.constant 0 : index
    %25 = vector.load %arg2[%c0_29, %c0_30, %c37, %c0_31] : memref<1x1x182x64xbf16, #tpu.memory_space<vmem>>, vector<1x1x144x64xbf16>
    %26 = vector.shape_cast %25 : vector<1x1x144x64xbf16> to vector<144x64xbf16>
    %c0_32 = arith.constant 0 : index
    %c0_33 = arith.constant 0 : index
    %c38 = arith.constant 38 : index
    %c0_34 = arith.constant 0 : index
    %27 = vector.load %arg2[%c0_32, %c0_33, %c38, %c0_34] : memref<1x1x182x64xbf16, #tpu.memory_space<vmem>>, vector<1x1x144x64xbf16>
    %28 = vector.shape_cast %27 : vector<1x1x144x64xbf16> to vector<144x64xbf16>
    %29 = tpu.concatenate %24, %26, %28 in 1 : vector<144x64xbf16>, vector<144x64xbf16>, vector<144x64xbf16> -> vector<144x192xbf16>
    %c2_35 = arith.constant 2 : index
    %c0_36 = arith.constant 0 : index
    %c0_37 = arith.constant 0 : index
    %30 = vector.load %arg3[%c2_35, %c0_36, %c0_37] : memref<3x192x128xbf16, #tpu.memory_space<vmem>>, vector<1x192x128xbf16>
    %31 = vector.shape_cast %30 : vector<1x192x128xbf16> to vector<192x128xbf16>
    %cst_38 = arith.constant dense<0.000000e+00> : vector<144x128xf32>
    %32 = tpu.matmul %29, %31, %cst_38 {dimension_numbers = #tpu.dot_dimension_numbers<[1], [0], [0], [1], [0, 0, 1, 1], [], []>} : vector<144x192xbf16>, vector<192x128xbf16>, vector<144x128xf32> -> vector<144x128xf32>
    %33 = arith.addf %22, %32 : vector<144x128xf32>
    %c0_39 = arith.constant 0 : index
    %c0_40 = arith.constant 0 : index
    %34 = vector.load %arg4[%c0_39, %c0_40] : memref<1x128xf32, #tpu.memory_space<vmem>>, vector<1x128xf32>
    %35 = vector.broadcast %34 : vector<1x128xf32> to vector<144x128xf32>
    %36 = arith.addf %33, %35 : vector<144x128xf32>
    %cst_41 = arith.constant 0.000000e+00 : f32
    %37 = vector.broadcast %cst_41 : f32 to vector<144x128xf32>
    %38 = arith.maximumf %36, %37 : vector<144x128xf32>
    %c0_42 = arith.constant 0 : index
    %c0_43 = arith.constant 0 : index
    %c0_44 = arith.constant 0 : index
    %39 = vector.load %arg5[%c0_42, %c0_43, %c0_44] : memref<1x144x128xf32, #tpu.memory_space<vmem>>, vector<1x144x128xf32>
    %40 = vector.shape_cast %39 : vector<1x144x128xf32> to vector<144x128xf32>
    %41 = vector.shape_cast %38 : vector<144x128xf32> to vector<1x144x128xf32>
    tpu.vector_store %arg5[%c0_42, %c0_43, %c0_44], %41 {strides = array<i32>} : memref<1x144x128xf32, #tpu.memory_space<vmem>>, vector<1x144x128xf32>,
    return
  }
  func.func @transform_0(%arg0: i32, %arg1: i32) -> (i32, i32, i32, i32) {
    %c0_i32 = arith.constant 0 : i32
    %c0_i32_0 = arith.constant 0 : i32
    %c0_i32_1 = arith.constant 0 : i32
    return %arg0, %arg1, %c0_i32, %c0_i32_0 : i32, i32, i32, i32
  }
  func.func @transform_1(%arg0: i32, %arg1: i32) -> (i32, i32, i32) {
    %c0_i32 = arith.constant 0 : i32
    %c0_i32_0 = arith.constant 0 : i32
    %c0_i32_1 = arith.constant 0 : i32
    %c0_i32_2 = arith.constant 0 : i32
    return %c0_i32, %c0_i32_0, %c0_i32_1 : i32, i32, i32
  }
  func.func @transform_2(%arg0: i32, %arg1: i32) -> (i32, i32) {
    %c0_i32 = arith.constant 0 : i32
    %c0_i32_0 = arith.constant 0 : i32
    %c0_i32_1 = arith.constant 0 : i32
    return %c0_i32, %c0_i32_0 : i32, i32
  }
  func.func @transform_3(%arg0: i32, %arg1: i32) -> (i32, i32, i32) {
    %c0_i32 = arith.constant 0 : i32
    %c0_i32_0 = arith.constant 0 : i32
    return %arg0, %arg1, %c0_i32 : i32, i32, i32
  }
}

</mosaic_0001>

<bundles_post_ra>
// kernel: tpu_custom_call.1
= control target key start
LH: loop header
LB: loop body
LE: loop exit
PB: predicated region body
PF: predicated region fallthrough
CT: control target
= control target key end

     0   :  { %8 = vsyncpa [#allocation3], 0  ;;  %s2899_s0 = inlined_call_operand.vmem [shape: bf16[2,2,182,64], index: 0, kind: input, shape index: {}]   ;;  %s2900_s1 = inlined_call_operand.vmem [shape: bf16[3,192,128], index: 1, kind: input, shape index: {}]   ;;  %s2901_s2 = inlined_call_operand.vmem [shape: f32[1,128], index: 2, kind: input, shape index: {}]   ;;  %s2902_s3 = inlined_call_operand.hbm [shape: f32[2,288,128], index: 3, kind: output, shape index: {}]  }
   0x1   :  { %10 = vsyncpa [#allocation3 + $0x1], 0  ;;  %s2115_s12 = smov 0   ;;  %s2117_s13 = smov 0  }
   0x2   :  { %s2119_s14 = smov 0   ;;  %s2121_s15 = smov 0  }
   0x3   :  { %s2123_s16 = smov 0   ;;  %s2125_s17 = smov 0  }
   0x4   :  { %s2127_s18 = smov 0   ;;  %s2129_s19 = smov 0  }
   0x5 LB: > { %s1678_s20 = sadd.s32 4294967295, %s2088_s19   ;;  %s1679_s21 = sadd.s32 4294967294, %s2088_s19   ;;  %s2088_s19 = sphi %s2129_s19, %s16_s19   ;;  %s2084_s18 = sphi %s2127_s18, %s2911_s18   ;;  %s2080_s17 = sphi %s2125_s17, %s2910_s17   ;;  %s2076_s16 = sphi %s2123_s16, %s2909_s16   ;;  %s2072_s15 = sphi %s2121_s15, %s2908_s15   ;;  %s2068_s14 = sphi %s2119_s14, %s2907_s14   ;;  %s2064_s13 = sphi %s2117_s13, %s2906_s13   ;;  %s2060_s12 = sphi %s2115_s12, %s2905_s12  }
   0x6   : > { %s25_s22 = sadd.s32 1, %s2080_s17  ;;  %s28_s23 = sadd.s32 1, %s2084_s18 }
   0x7   : > { %p26_p0 = scmp.ge.s32.totalorder %s25_s22, 2  ;;  %p117_p1 = scmp.ne.s32.totalorder %s2068_s14, %s2064_s13 }
   0x8   : > { %p118_p2 = scmp.eq.s32.totalorder %s1678_s20, 3  ;;  %p123_p5 = scmp.ne.s32.totalorder %s2064_s13, %s2060_s12 }
   0x9   : > { %s2913_s22 = smov (%p26_p0, %s25_s22), 0  ;;  %s2915_s23 = smov (!%p26_p0, %s28_s23), %s2084_s18 }
   0xa   : > { %s103_s24 = ssub.s32 %s2080_s17, %s2913_s22  ;;  %p2166_p3 = por %p118_p2, %p117_p1 }
   0xb   : > { %p30_p4 = scmp.ge.s32.totalorder %s2915_s23, 2  ;;  %p124_p6 = scmp.eq.s32.totalorder %s1679_s21, 3 }
   0xc   : > { %p1682_p7 = scmp.ge.s32.totalorder %s2088_s19, 1  ;;  %p160_p9 = scmp.lt.s32.totalorder %s2088_s19, 5 }
   0xd   : > { %s2917_s23 = smov (%p30_p4, %s2915_s23), 0  ;;  %p2175_p8 = por %p124_p6, %p123_p5 }
   0xe   : > { %s102_s27 = ssub.s32 %s2084_s18, %s2917_s23  ;;  %s107_s28 = sadd.s32 1, %s2068_s14 }
   0xf   : > { %s104_s29 = sor.u32 %s103_s24, %s102_s27  ;;  %p161_p10 = pnand %p1682_p7, %p160_p9 }
  0x10   : > { %p105_p11 = scmp.eq.s32.totalorder %s104_s29, 0  ;;  %p188_p12 = scmp.lt.s32.totalorder (!%p161_p10), %s2076_s16, 1  ;;  %v1947_v0 = vld [vmem:[%s2900_s1] sm:$0xff] (!%p161_p10)   ;;  %v2090_v1 = vmov (!%p161_p10), 0   ;;  %v1952_v3 = vld [vmem:[%s2900_s1 + $0x8] sm:$0xff] (!%p161_p10)   ;;  %v1955_v5 = vld [vmem:[%s2900_s1 + $0x10] sm:$0xff] (!%p161_p10)  }
  0x11   : > { %164 = sbr.rel (%p161_p10) target bundleno = 503 (0x1f7), region = 32  ;;  %p190_p13 = scmp.lt.s32.totalorder (!%p161_p10), %s2072_s15, 1  ;;  %892 = vmatprep.subr.bf16.mxu1 (!%p161_p10), %v2090_v1  ;;  %688 = vmatprep.subr.bf16.mxu0 (!%p161_p10), %v2090_v1  ;;  %v1951_v2 = vld [vmem:[%s2900_s1 + $0x60] sm:$0xff] (!%p161_p10)   ;;  %v1953_v4 = vld [vmem:[%s2900_s1 + $0x68] sm:$0xff] (!%p161_p10)   ;;  %v1957_v6 = vld [vmem:[%s2900_s1 + $0x70] sm:$0xff] (!%p161_p10)   ;;  %vm365_vm1 = vcmask (!%p161_p10), 1046528  }
  0x12   : > { %s2184_s30 = scalar_select %p105_p11, %s2068_s14, %s107_s28  }
  0x13   : > { %893 = vmatpush1.bf16.msra.mxu1 (!%p161_p10), %v1947_v0  ;;  %689 = vmatpush1.bf16.msra.mxu0 (!%p161_p10), %v1951_v2  ;;  %v1958_v7 = vld [vmem:[%s2900_s1 + $0x18] sm:$0xff] (!%p161_p10)   ;;  %vm267_vm0 = vsmask.f32 (!%p161_p10), 7424  ;;  %v1960_v12 = vld [vmem:[%s2900_s1 + $0x20] sm:$0xff] (!%p161_p10)   ;;  %s2091_s29 = smov (!%p161_p10), 64   ;;  %vm385_vm2 = vcmask (!%p161_p10), 523264  }
  0x14   : > { %894 = vmatprep.subr.bf16.mxu1 (!%p161_p10), %v2090_v1  ;;  %690 = vmatprep.subr.bf16.mxu0 (!%p161_p10), %v2090_v1  ;;  %v1959_v8 = vld [vmem:[%s2900_s1 + $0x78] sm:$0xff] (!%p161_p10)   ;;  %vm1246_vm3 = vcmask (!%p161_p10), 1045504   ;;  %s1854_s21 = smul.u32 (!%p161_p10), 36, %s2076_s16 }
  0x17   : > { %895 = vmatpush1.bf16.msra.mxu1 (!%p161_p10), %v1952_v3  ;;  %691 = vmatpush1.bf16.msra.mxu0 (!%p161_p10), %v1953_v4 }
  0x18   : > { %s189_s8 = scalar_select %p188_p12, %s2076_s16, 1  ;;  %896 = vmatprep.subr.bf16.mxu1 %v2090_v1  ;;  %692 = vmatprep.subr.bf16.mxu0 %v2090_v1 }
  0x19   : > { %s191_s11 = scalar_select %p190_p13, %s2072_s15, 1 }
  0x1a   : > { %s1853_s24 = smul.u32 46, %s189_s8 }
  0x1b   : > { %s1852_s27 = smul.u32 23, %s191_s11  ;;  %897 = vmatpush1.bf16.msra.mxu1 %v1955_v5  ;;  %693 = vmatpush1.bf16.msra.mxu0 %v1957_v6 }
  0x1c   : > { %898 = vmatprep.subr.bf16.mxu1 %v2090_v1  ;;  %694 = vmatprep.subr.bf16.mxu0 %v2090_v1 }
  0x1d   : > { %s194_s4 = sadd.s32 %s1853_s24, %s1852_s27 }
  0x1e   : > { %s1683_s7 = sshll.u32 %s194_s4, 2 }
  0x1f   : > { %s2220_s20 = scalar_lea.vmem %s2899_s0, %s1683_s7  ;;  %899 = vmatpush1.bf16.msra.mxu1 %v1958_v7  ;;  %695 = vmatpush1.bf16.msra.mxu0 %v1959_v8  ;;  %s2092_s7 = smov [#allocation2]  }
  0x20   : > { %v2226_v9 = vld [vmem:[%s2220_s20 + $0x18] sm:$0xff]   ;;  %v2229_v10 = vld [vmem:[%s2220_s20 + $0x20] sm:$0xff]   ;;  %v2233_v11 = vld [vmem:[%s2220_s20 + $0x10] sm:$0xff]   ;;  %900 = vmatprep.subr.bf16.mxu1 %v2090_v1  ;;  %696 = vmatprep.subr.bf16.mxu0 %v2090_v1 }
  0x21   : > { %v292_v13 = vshll.u32 %v2226_v9, 16  ;;  %v296_v14 = vshrl.u32 %v2226_v9, 16  ;;  %v300_v15 = vshll.u32 %v2229_v10, 16  ;;  %v2243_v16 = vld [vmem:[%s2220_s20 + $0xc] sm:$0xf]  ;;  %v284_v18 = vshll.u32 %v2233_v11, 16 }
  0x22   : > { %v2246_v17 = vld [vmem:[%s2220_s20 + $0x28] sm:$0xff]   ;;  %v288_v19 = vshrl.u32 %v2233_v11, 16  ;;  %v199_v21 = vld [vmem:[%s2220_s20] sm:$0xf]  ;;  %v2256_v25 = vld [vmem:[%s2220_s20 + $0x4] sm:$0xf] }
  0x23   : > { %v437_v20 = vld [vmem:[%s2220_s20 + $0x8] sm:$0xe]  ;;  %v294_v22 = vrot.slane %v292_v13, 1  ;;  %v302_v23 = vrot.slane %v300_v15, 1  ;;  %v286_v27 = vrot.slane %v284_v18, 1  ;;  %v2261_v28 = vcombine.low %v199_v21, %v2256_v25  ;;  %v2272_v35 = vld [vmem:[%s2220_s20 + $0x30] sm:$0xff]   ;;  %901 = vmatpush1.bf16.msra.mxu1 %v1960_v12 }
  0x24   : > { %v2253_v24 = vcombine.low %v437_v20, %v2243_v16  ;;  %v201_v26 = vld [vmem:[%s2220_s20 + $0x8] sm:$0xf]  ;;  %v304_v30 = vshrl.u32 %v2229_v10, 16  ;;  %v308_v34 = vshll.u32 %v2246_v17, 16  ;;  %v2278_v40 = vld [vmem:[%s2220_s20 + $0x38] sm:$0xff]   ;;  %902 = vmatprep.subr.bf16.mxu1 %v2090_v1  ;;  %v2286_v48 = vld [vmem:[%s2220_s20 + $0x40] sm:$0xff]  }
  0x25   : > { %v2264_v29 = vcombine.low %v201_v26, %v2243_v16  ;;  %v298_v31 = vor.u32 %v296_v14, %v294_v22  ;;  %v290_v36 = vor.u32 %v288_v19, %v286_v27  ;;  %v269_v37 = vshrl.u32 %v2261_v28, 16  ;;  %v2294_v57 = vld [vmem:[%s2220_s20 + $0x48] sm:$0xff]   ;;  %v2298_v60 = vld [vmem:[%s2220_s20 + $0x18] sm:$0xff]   ;;  %v2303_v63 = vld [vmem:[%s2220_s20 + $0x50] ss:$0 sps:$4 sm:$0x33]  }
  0x26   : > { %v458_v32 = vshrl.u32 %v2253_v24, 16  ;;  %v460_v33 = vshll.u32 %v2253_v24, 16  ;;  %v271_v38 = vshll.u32 %v2261_v28, 16  ;;  %v310_v43 = vrot.slane %v308_v34, 1  ;;  %v997_v0 = vld [vmem:[%s2220_s20 + $0x10] sm:$0xc] }
  0x27   : > { %v276_v39 = vshll.u32 %v2264_v29, 16  ;;  %v303_v41 = vsel %vm267_vm0, %v298_v31, %v302_v23  ;;  %v295_v44 = vsel %vm267_vm0, %v290_v36, %v294_v22  ;;  %v280_v47 = vshrl.u32 %v2264_v29, 16  ;;  %v2312_v6 = vld [vmem:[%s2220_s20 + $0x14] sm:$0xf]  ;;  %v2321_v19 = vld [vmem:[%s2220_s20 + $0x20] sm:$0xff]  }
  0x28   : > { %v462_v42 = vrot.slane %v460_v33, 1  ;;  %350 = vrot.lane.b32.xlu1 %v303_v41, %s2091_s29  ;;  %v273_v45 = vrot.slane %v271_v38, 1  ;;  %348 = vrot.lane.b32.xlu0 %v295_v44, %s2091_s29  ;;  %v306_v50 = vor.u32 %v304_v30, %v302_v23  ;;  %v312_v51 = vshrl.u32 %v2246_v17, 16  ;;  %v2330_v26 = vld [vmem:[%s2220_s20 + $0x48] ss:$0 sps:$4 sm:$0x11]  }
  0x29   : > { %v278_v46 = vrot.slane %v276_v39, 1  ;;  %v316_v52 = vshll.u32 %v2272_v35, 16  ;;  %v320_v55 = vshrl.u32 %v2272_v35, 16  ;;  %v324_v56 = vshll.u32 %v2278_v40, 16  ;;  %v2336_v33 = vld [vmem:[%s2220_s20 + $0x28] sm:$0xff]  }
  0x2a   : > { %v463_v49 = vor.u32 %v462_v42, %v458_v32  ;;  %v274_v53 = vor.u32 %v273_v45, %v269_v37  ;;  %v332_v62 = vshll.u32 %v2286_v48, 16  ;;  %v311_v2 = vsel %vm267_vm0, %v306_v50, %v310_v43  ;;  %v2340_v37 = vld [vmem:[%s2220_s20 + $0x38] sm:$0xff]   ;;  %v2348_v45 = vld [vmem:[%s2220_s20 + $0x40] sm:$0xff]  }
  0x2b   : > { %v282_v54 = vor.u32 %v280_v47, %v278_v46  ;;  %v318_v59 = vrot.slane %v316_v52, 1  ;;  %v314_v4 = vor.u32 %v312_v51, %v310_v43  ;;  %v328_v5 = vshrl.u32 %v2278_v40, 16  ;;  %v2357_v52 = vld [vmem:[%s2220_s20 + $0x48] sm:$0xff]  }
  0x2c   : > { %v464_v58 = vsel %vm267_vm0, %v463_v49, %v286_v27  ;;  %v279_v61 = vsel %vm267_vm0, %v274_v53, %v278_v46  ;;  %v326_v8 = vrot.slane %v324_v56, 1  ;;  %v336_v12 = vshrl.u32 %v2286_v48, 16  ;;  %v1962_v56 = vld [vmem:[%s2900_s1 + $0x80] sm:$0xff]  }
  0x2d   : > { %481 = vrot.lane.b32.xlu0 %v464_v58, %s2091_s29  ;;  %344 = vrot.lane.b32.xlu1 %v279_v61, %s2091_s29  ;;  %v287_v3 = vsel %vm267_vm0, %v282_v54, %v286_v27  ;;  %v322_v7 = vor.u32 %v320_v55, %v318_v59  ;;  %v466_v13 = vshll.u32 %v2294_v57, 16  ;;  %v474_v14 = vshll.u32 %v2303_v63, 16  ;;  %v2361_v55 = vld [vmem:[%s2220_s20 + $0x30] sm:$0xff]  }
  0x2e   : > { %v2318_v15 = vcombine.low %v997_v0, %v2312_v6  ;;  %v334_v18 = vrot.slane %v332_v62, 1  ;;  %v319_v20 = vsel %vm267_vm0, %v314_v4, %v318_v59  ;;  %v470_v21 = vshrl.u32 %v2294_v57, 16  ;;  %v1963_v0 = vld [vmem:[%s2900_s1 + $0x28] sm:$0xff]   ;;  %697 = vmatpush1.bf16.msra.mxu0 %v1962_v56 }
  0x2f   : > { %v1077_v23 = vshll.u32 %v2298_v60, 16  ;;  %v327_v27 = vsel %vm267_vm0, %v322_v7, %v326_v8  ;;  %v330_v30 = vor.u32 %v328_v5, %v326_v8  ;;  %v468_v32 = vrot.slane %v466_v13, 1  ;;  %v1964_v7 = vld [vmem:[%s2900_s1 + $0x88] sm:$0xff]   ;;  %903 = vmatpush1.bf16.msra.mxu1 %v1963_v0  ;;  %698 = vmatprep.subr.bf16.mxu0 %v2090_v1 }
  0x30   : > { %v1072_v22 = vshll.u32 %v2318_v15, 16  ;;  %v2333_v31 = vor.u32 %v336_v12, %v334_v18  ;;  %v476_v34 = vrot.slane %v474_v14, 1  ;;  %v478_v36 = vshrl.u32 %v2303_v63, 16  ;;  %904 = vmatprep.subr.bf16.mxu1 %v2090_v1 }
  0x31   : > { %352 = vrot.lane.b32.xlu0 %v311_v2, %s2091_s29  ;;  %346 = vrot.lane.b32.xlu1 %v287_v3, %s2091_s29  ;;  %v1070_v38 = vshrl.u32 %v2318_v15, 16  ;;  %v1081_v39 = vshrl.u32 %v2298_v60, 16  ;;  %v472_v41 = vor.u32 %v470_v21, %v468_v32  ;;  %v1079_v43 = vrot.slane %v1077_v23, 1 }
  0x32   : > { %v1074_v42 = vrot.slane %v1072_v22, 1  ;;  %v1085_v44 = vshll.u32 %v2321_v19, 16  ;;  %v335_v46 = vsel %vm267_vm0, %v330_v30, %v334_v18  ;;  %v469_v47 = vsel %vm267_vm0, %v2333_v31, %v468_v32  ;;  %v2383_v18 = vld [vmem:[%s2220_s20 + $0x50] sm:$0xff]   ;;  %699 = vmatpush1.bf16.msra.mxu0 %v1964_v7 }
  0x33   : > { %v340_v49 = vshll.u32 %v2330_v26, 16  ;;  %v1093_v50 = vshll.u32 %v2336_v33, 16  ;;  %v1109_v51 = vshll.u32 %v2340_v37, 16  ;;  %v480_v53 = vor.u32 %v478_v36, %v476_v34  ;;  %v1966_v22 = vld [vmem:[%s2900_s1 + $0x90] sm:$0xff]   ;;  %700 = vmatprep.subr.bf16.mxu0 %v2090_v1 }
  0x34   : > { %v1117_v54 = vshll.u32 %v2348_v45, 16  ;;  %v477_v58 = vsel %vm267_vm0, %v472_v41, %v476_v34  ;;  %v1083_v59 = vor.u32 %v1081_v39, %v1079_v43  ;;  %v1087_v61 = vrot.slane %v1085_v44, 1  ;;  %v2402_v39 = vld [vmem:[%s2220_s20 + $0x58] ss:$0 sps:$4 sm:$0x77]  }
  0x35   : > { %354 = vrot.lane.b32.xlu0 %v319_v20, %s2091_s29  ;;  %356 = vrot.lane.b32.xlu1 %v327_v27, %s2091_s29  ;;  %v1089_v62 = vshrl.u32 %v2321_v19, 16  ;;  %v1075_v2 = vor.u32 %v1074_v42, %v1070_v38  ;;  %v342_v3 = vrot.slane %v340_v49, 1  ;;  %v1095_v4 = vrot.slane %v1093_v50, 1  ;;  %v1965_v20 = vld [vmem:[%s2900_s1 + $0x30] sm:$0xff]   ;;  %v1967_v41 = vld [vmem:[%s2900_s1 + $0x38] sm:$0xff]  }
  0x36   : > { %v1113_v5 = vshrl.u32 %v2340_v37, 16  ;;  %v2377_v8 = vrot.slane %v1109_v51, 1  ;;  %v1121_v12 = vshrl.u32 %v2348_v45, 16  ;;  %v1125_v13 = vshll.u32 %v2357_v52, 16  ;;  %905 = vmatpush1.bf16.msra.mxu1 %v1965_v20  ;;  %701 = vmatpush1.bf16.msra.mxu0 %v1966_v22  ;;  %v1968_v51 = vld [vmem:[%s2900_s1 + $0x98] sm:$0xff]   ;;  %v1971_v20 = vld [vmem:[%s2900_s1 + $0x48] sm:$0xff]  }
  0x37   : > { %v1097_v14 = vshrl.u32 %v2336_v33, 16  ;;  %v1119_v21 = vrot.slane %v1117_v54, 1  ;;  %v1101_v23 = vshll.u32 %v2361_v55, 16  ;;  %v1129_v27 = vshrl.u32 %v2357_v52, 16  ;;  %906 = vmatprep.subr.bf16.mxu1 %v2090_v1  ;;  %702 = vmatprep.subr.bf16.mxu0 %v2090_v1 }
  0x38   : > { %v1080_v30 = vsel %vm267_vm0, %v1075_v2, %v1079_v43  ;;  %v1088_v32 = vsel %vm267_vm0, %v1083_v59, %v1087_v61  ;;  %v1091_v34 = vor.u32 %v1089_v62, %v1087_v61  ;;  %v1127_v36 = vrot.slane %v1125_v13, 1 }
  0x39   : > { %358 = vrot.lane.b32.xlu0 %v335_v46, %s2091_s29  ;;  %483 = vrot.lane.b32.xlu1 %v469_v47, %s2091_s29  ;;  %v1133_v38 = vshll.u32 %v2383_v18, 16  ;;  %v367_v42 = vrot.slane %v2264_v29, 1  ;;  %v343_v43 = vsel %vm267_vm0, %v2333_v31, %v342_v3  ;;  %v2414_v44 = vrot.slane %v2233_v11, 1  ;;  %v1969_v31 = vld [vmem:[%s2900_s1 + $0x40] sm:$0xff]  }
  0x3a   : > { %v371_v46 = vrot.slane %v2226_v9, 1  ;;  %v1096_v47 = vsel %vm267_vm0, %v1091_v34, %v1095_v4  ;;  %v1115_v49 = vor.u32 %v1113_v5, %v2377_v8  ;;  %v1123_v50 = vor.u32 %v1121_v12, %v1119_v21  ;;  %907 = vmatpush1.bf16.msra.mxu1 %v1967_v41  ;;  %703 = vmatpush1.bf16.msra.mxu0 %v1968_v51  ;;  %v442_v41 = vld [vmem:[%s2220_s20 + $0x8] sm:$0xc] }
  0x3b   : > { %v2435_v56 = vsel %vm365_vm1, %v367_v42, %v2414_v44  ;;  %v1103_v59 = vrot.slane %v1101_v23, 1  ;;  %v1105_v61 = vshrl.u32 %v2361_v55, 16  ;;  %908 = vmatprep.subr.bf16.mxu1 %v2090_v1  ;;  %v1135_v0 = vrot.slane %v1133_v38, 1  ;;  %704 = vmatprep.subr.bf16.mxu0 %v2090_v1  ;;  %v1972_v23 = vld [vmem:[%s2900_s1 + $0xa8] sm:$0xff]   ;;  %v218_v38 = vld [vmem:[%s2220_s20] sm:$0xe] }
  0x3c   : > { %v2429_v54 = vsel %vm365_vm1, %v2414_v44, %v371_v46  ;;  %v1137_v2 = vshrl.u32 %v2383_v18, 16  ;;  %v1120_v5 = vsel %vm267_vm0, %v1115_v49, %v1119_v21  ;;  %v1128_v7 = vsel %vm267_vm0, %v1123_v50, %v1127_v36  ;;  %v1974_v49 = vld [vmem:[%s2900_s1 + $0xb0] sm:$0xff]  }
  0x3d   : > { %485 = vrot.lane.b32.xlu0 %v477_v58, %s2091_s29  ;;  %487 = vrot.lane.b32.xlu1 %v480_v53, %s2091_s29  ;;  %v373_v53 = vrot.slane %v2229_v10, 1  ;;  %v1099_v58 = vor.u32 %v1097_v14, %v1095_v4  ;;  %v546_v3 = vrot.slane %v2429_v54, 1  ;;  %v1131_v12 = vor.u32 %v1129_v27, %v1127_v36  ;;  %v1970_v14 = vld [vmem:[%s2900_s1 + $0xa0] sm:$0xff]   ;;  %v1973_v36 = vld [vmem:[%s2900_s1 + $0x50] sm:$0xff]  }
  0x3e   : > { %v1141_v13 = vshll.u32 %v2402_v39, 16  ;;  %909 = vmatpush1.bf16.msra.mxu1 %v1969_v31  ;;  %705 = vmatpush1.bf16.msra.mxu0 %v1970_v14 }
  0x3f   : > { %v2442_v62 = vsel %vm365_vm1, %v371_v46, %v373_v53  ;;  %910 = vmatprep.subr.bf16.mxu1 %v2090_v1  ;;  %v1104_v22 = vsel %vm267_vm0, %v1099_v58, %v1103_v59  ;;  %v1136_v27 = vsel %vm267_vm0, %v1131_v12, %v1135_v0  ;;  %706 = vmatprep.subr.bf16.mxu0 %v2090_v1 }
  0x40   : > { %v550_v4 = vrot.slane %v2442_v62, 1  ;;  %v1143_v34 = vrot.slane %v1141_v13, 1  ;;  %v1699_v46 = vcombine.low %v442_v41, %v2243_v16  ;;  %v1975_v16 = vld [vmem:[%s2900_s1 + $0x58] sm:$0xff]   ;;  %v375_v13 = vrot.slane %v2246_v17, 1 }
  0x41   : > { %1148 = vrot.lane.b32.xlu0 %v1080_v30, %s2091_s29  ;;  %1150 = vrot.lane.b32.xlu1 %v1088_v32, %s2091_s29  ;;  %v1107_v30 = vor.u32 %v1105_v61, %v1103_v59  ;;  %v1139_v32 = vor.u32 %v1137_v2, %v1135_v0  ;;  %v1976_v0 = vld [vmem:[%s2900_s1 + $0xb8] sm:$0xff]  }
  0x42   : > { %v2462_v21 = vsel %vm365_vm1, %v546_v3, %v550_v4  ;;  %911 = vmatpush1.bf16.msra.mxu1 %v1971_v20  ;;  %707 = vmatpush1.bf16.msra.mxu0 %v1972_v23 }
  0x43   : > { %912 = vmatprep.subr.bf16.mxu1 %v2090_v1  ;;  %v1112_v50 = vsel %vm267_vm0, %v1107_v30, %v2377_v8  ;;  %v1144_v51 = vsel %vm267_vm0, %v1139_v32, %v1143_v34  ;;  %708 = vmatprep.subr.bf16.mxu0 %v2090_v1 }
  0x45   : > { %360 = vrot.lane.b32.xlu0 %v343_v43, %s2091_s29  ;;  %1152 = vrot.lane.b32.xlu1 %v1096_v47, %s2091_s29  ;;  %v1694_v43 = vcombine.low %v218_v38, %v2256_v25  ;;  %v1145_v47 = vshrl.u32 %v2402_v39, 16  ;;  %v492_v25 = vrot.slane %v1699_v46, 1  ;;  %v1982_v38 = vld [vmem:[%s2900_s1 + $0xd8] sm:$0xff]   ;;  %v1983_v46 = vld [vmem:[%s2900_s1 + $0xe0] sm:$0xff]  }
  0x46   : > { %913 = vmatpush1.bf16.msra.mxu1 %v1973_v36  ;;  %709 = vmatpush1.bf16.msra.mxu0 %v1974_v49 }
  0x47   : > { %v366_v31 = vrot.slane %v1694_v43, 1  ;;  %914 = vmatprep.subr.bf16.mxu1 %v2090_v1  ;;  %v493_v8 = vsel %vm365_vm1, %v492_v25, %v2414_v44  ;;  %v1147_v59 = vor.u32 %v1145_v47, %v1143_v34  ;;  %710 = vmatprep.subr.bf16.mxu0 %v2090_v1  ;;  %v379_v47 = vrot.slane %v2278_v40, 1 }
  0x48   : > { %v545_v61 = vrot.slane %v493_v8, 1  ;;  %v2583_v8 = vrot.slane %v2286_v48, 1 }
  0x49   : > { %1158 = vrot.lane.b32.xlu0 %v1120_v5, %s2091_s29  ;;  %1160 = vrot.lane.b32.xlu1 %v1128_v7, %s2091_s29  ;;  %v368_v58 = vsel %vm365_vm1, %v366_v31, %v367_v42  ;;  %v1979_v7 = vld [vmem:[%s2900_s1 + $0xc0] sm:$0xff]  }
  0x4a   : > { %1757 = vmatprep.mubr.msk.bf16.mxu1 %vm385_vm2, %v368_v58  ;;  %915 = vmatpush1.bf16.msra.mxu1 %v1975_v16  ;;  %v547_v42 = vsel %vm365_vm1, %v545_v61, %v546_v3  ;;  %v1985_v58 = vld [vmem:[%s2900_s1 + $0xf0] sm:$0xff]  }
  0x4b   : > { %1736 = vmatprep.mubr.msk.bf16.mxu0 %vm385_vm2, %v547_v42  ;;  %1827 = vmatprep.subr.bf16.mxu1 %v2090_v1  ;;  %v1986_v42 = vld [vmem:[%s2900_s1 + $0xf8] sm:$0xff]  }
  0x4c   : > { %711 = vmatpush1.bf16.msra.mxu0 %v1976_v0  ;;  %v2592_v0 = vsel %vm365_vm1, %v379_v47, %v2583_v8 }
  0x4d   : > { %1154 = vrot.lane.b32.xlu0 %v1104_v22, %s2091_s29  ;;  %1162 = vrot.lane.b32.xlu1 %v1136_v27, %s2091_s29 }
  0x4e   : > { %1393 = vmatprep.subr.bf16.mxu0 %v2090_v1 }
  0x51   : > { %1156 = vrot.lane.b32.xlu0 %v1112_v50, %s2091_s29  ;;  %1164 = vrot.lane.b32.xlu1 %v1144_v51, %s2091_s29  ;;  %v1984_v51 = vld [vmem:[%s2900_s1 + $0xe8] sm:$0xff]  }
  0x55   : > { %1166 = vrot.lane.b32.xlu0 %v1147_v59, %s2091_s29  ;;  %s1585_s29 = smul.u32 18, %s2072_s15 }
  0x57   : > { %s1590_s24 = sadd.s32 %s1854_s21, %s1585_s29 }
  0x58   : > { %s1824_s15 = sshll.u32 %s1590_s24, 7 }
  0x59   : > { %s2839_s4 = scalar_lea.hbm %s2902_s3, %s1824_s15 }
  0x9a   : > { %v351_v44 = vpop.permute.xlu1 %350  ;;  %v349_v2 = vpop.permute.xlu0 %348 }
  0x9b   : > { %v393_v5 = vsel %vm385_vm2, %v2233_v11, %v349_v2  ;;  %v1980_v11 = vld [vmem:[%s2900_s1 + $0xc8] sm:$0xff]   ;;  %v566_v2 = vrot.slane %v2592_v0, 1 }
  0x9c   : > { %v543_v22 = vrot.slane %v393_v5, 1 }
  0x9f   : > { %v482_v12 = vpop.permute.xlu0 %481  ;;  %v345_v3 = vpop.permute.xlu1 %344 }
  0xa0   : > { %v499_v14 = vsel %vm385_vm2, %v2253_v24, %v482_v12  ;;  %v387_v20 = vsel %vm385_vm2, %v2261_v28, %v345_v3  ;;  %v376_v24 = vsel %vm365_vm1, %v373_v53, %v375_v13  ;;  %v396_v28 = vsel %vm385_vm2, %v2226_v9, %v351_v44  ;;  %v1981_v53 = vld [vmem:[%s2900_s1 + $0xd0] sm:$0xff]   ;;  %v1987_v12 = vld [vmem:[%s2900_s1 + $0x100] sm:$0xff]  }
  0xa1   : > { %v542_v23 = vrot.slane %v499_v14, 1  ;;  %925 = vmatmul.mubr.bf16.vlgmr.msra.gmra.mrb[0].mxu1 %v387_v20  ;;  %v554_v32 = vrot.slane %v376_v24, 1  ;;  %v548_v34 = vrot.slane %v396_v28, 1  ;;  %v377_v9 = vrot.slane %v2272_v35, 1  ;;  %v1989_v20 = vld [vmem:[%s2900_s1 + $0x108] sm:$0xff]  }
  0xa2   : > { %1758 = vmatprep.mubr.msk.bf16.mxu1 %vm385_vm2, %v2435_v56  ;;  %1839 = vmatpush1.bf16.msra.mxu1 %v1979_v7 }
  0xa3   : > { %v544_v27 = vsel %vm365_vm1, %v542_v23, %v543_v22  ;;  %v347_v30 = vpop.permute.xlu1 %346  ;;  %1828 = vmatprep.subr.bf16.mxu1 %v2090_v1  ;;  %v353_v36 = vpop.permute.xlu0 %352  ;;  %v378_v41 = vsel %vm365_vm1, %v375_v13, %v377_v9  ;;  %v380_v31 = vsel %vm365_vm1, %v377_v9, %v379_v47  ;;  %v1184_v47 = vrot.slane %v2357_v52, 1 }
  0xa4   : > { %721 = vmatmul.mubr.bf16.vlgmr.msra.gmra.mrb[0].mxu0 %v544_v27  ;;  %v390_v56 = vsel %vm385_vm2, %v2264_v29, %v347_v30  ;;  %v555_v29 = vsel %vm365_vm1, %v550_v4, %v554_v32  ;;  %v399_v43 = vsel %vm385_vm2, %v2229_v10, %v353_v36  ;;  %v496_v30 = vrot.slane %v2303_v63, 1 }
  0xa5   : > { %1394 = vmatpush1.bf16.msra.mxu0 %v1979_v7  ;;  %1737 = vmatprep.mubr.msk.bf16.mxu0 %vm385_vm2, %v2462_v21  ;;  %v549_v21 = vsel %vm365_vm1, %v543_v22, %v548_v34  ;;  %v552_v4 = vrot.slane %v399_v43, 1  ;;  %v494_v7 = vrot.slane %v2294_v57, 1 }
  0xa6   : > { %1395 = vmatprep.subr.bf16.mxu0 %v2090_v1  ;;  %1840 = vmatpush1.bf16.msra.mxu1 %v1980_v11 }
  0xa7   : > { %1829 = vmatprep.subr.bf16.mxu1 %v2090_v1  ;;  %v355_v10 = vpop.permute.xlu0 %354  ;;  %v553_v50 = vsel %vm365_vm1, %v548_v34, %v552_v4  ;;  %v495_v14 = vsel %vm365_vm1, %v2583_v8, %v494_v7  ;;  %v497_v63 = vsel %vm365_vm1, %v494_v7, %v496_v30  ;;  %v1186_v7 = vrot.slane %v2383_v18, 1 }
  0xa8   : > { %v402_v25 = vsel %vm385_vm2, %v2246_v17, %v355_v10  ;;  %v357_v17 = vpop.permute.xlu1 %356  ;;  %v574_v9 = vrot.slane %v497_v63, 1 }
  0xa9   : > { %933 = vmatmul.mubr.bf16.gmra.mrb[4].mxu1 %v390_v56  ;;  %1396 = vmatpush1.bf16.msra.mxu0 %v1980_v11  ;;  %v556_v16 = vrot.slane %v402_v25, 1  ;;  %v405_v44 = vsel %vm385_vm2, %v2272_v35, %v357_v17  ;;  %v570_v11 = vrot.slane %v495_v14, 1 }
  0xaa   : > { %1397 = vmatprep.subr.bf16.mxu0 %v2090_v1  ;;  %1759 = vmatprep.mubr.msk.bf16.mxu1 %vm385_vm2, %v2429_v54  ;;  %v558_v54 = vrot.slane %v378_v41, 1 }
  0xab   : > { %1841 = vmatpush1.bf16.msra.mxu1 %v1981_v53  ;;  %v557_v61 = vsel %vm365_vm1, %v552_v4, %v556_v16  ;;  %v359_v35 = vpop.permute.xlu0 %358 }
  0xac   : > { %729 = vmatmul.mubr.bf16.gmra.mrb[4].mxu0 %v549_v21  ;;  %1830 = vmatprep.subr.bf16.mxu1 %v2090_v1  ;;  %v559_v49 = vsel %vm365_vm1, %v554_v32, %v558_v54  ;;  %v408_v22 = vsel %vm385_vm2, %v2278_v40, %v359_v35  ;;  %v484_v23 = vpop.permute.xlu1 %483  ;;  %v571_v40 = vsel %vm365_vm1, %v566_v2, %v570_v11  ;;  %v1991_v32 = vld [vmem:[%s2900_s1 + $0x118] sm:$0xff]  }
  0xad   : > { %1398 = vmatpush1.bf16.msra.mxu0 %v1981_v53  ;;  %1738 = vmatprep.mubr.msk.bf16.mxu0 %vm385_vm2, %v555_v29  ;;  %v564_v27 = vrot.slane %v408_v22, 1  ;;  %v501_v34 = vsel %vm385_vm2, %v2286_v48, %v484_v23  ;;  %v1017_v29 = vld [vmem:[%s2220_s20 + $0x10] sm:$0x8]  ;;  %v1176_v23 = vrot.slane %v2336_v33, 1 }
  0xae   : > { %1399 = vmatprep.subr.bf16.mxu0 %v2090_v1  ;;  %v568_v36 = vrot.slane %v501_v34, 1 }
  0xaf   : > { %1842 = vmatpush1.bf16.msra.mxu1 %v1982_v38  ;;  %v486_v53 = vpop.permute.xlu0 %485 }
  0xb0   : > { %1831 = vmatprep.subr.bf16.mxu1 %v2090_v1  ;;  %v569_v4 = vsel %vm365_vm1, %v564_v27, %v568_v36  ;;  %v503_v10 = vsel %vm385_vm2, %v2294_v57, %v486_v53 }
  0xb1   : > { %941 = vmatmul.mubr.bf16.gmra.mrb[8].mxu1 %v393_v5  ;;  %1400 = vmatpush1.bf16.msra.mxu0 %v1982_v38  ;;  %v560_v5 = vrot.slane %v405_v44, 1 }
  0xb2   : > { %1760 = vmatprep.mubr.msk.bf16.mxu1 %vm385_vm2, %v2442_v62  ;;  %1401 = vmatprep.subr.bf16.mxu0 %v2090_v1  ;;  %v562_v62 = vrot.slane %v380_v31, 1 }
  0xb3   : > { %1843 = vmatpush1.bf16.msra.mxu1 %v1983_v46  ;;  %v561_v13 = vsel %vm365_vm1, %v556_v16, %v560_v5  ;;  %v565_v56 = vsel %vm365_vm1, %v560_v5, %v564_v27  ;;  %v1149_v21 = vpop.permute.xlu0 %1148 }
  0xb4   : > { %737 = vmatmul.mubr.bf16.gmra.mrb[8].mxu0 %v553_v50  ;;  %1832 = vmatprep.subr.bf16.mxu1 %v2090_v1  ;;  %v563_v59 = vsel %vm365_vm1, %v558_v54, %v562_v62  ;;  %v567_v3 = vsel %vm365_vm1, %v562_v62, %v566_v2  ;;  %v1777_v54 = vcombine.low %v1017_v29, %v2312_v6  ;;  %v1178_v29 = vrot.slane %v2361_v55, 1 }
  0xb5   : > { %1739 = vmatprep.mubr.msk.bf16.mxu0 %vm385_vm2, %v559_v49  ;;  %1402 = vmatpush1.bf16.msra.mxu0 %v1983_v46  ;;  %v1182_v46 = vrot.slane %v2348_v45, 1  ;;  %v578_v49 = vrot.slane %v496_v30, 1 }
  0xb6   : > { %1403 = vmatprep.subr.bf16.mxu0 %v2090_v1  ;;  %v1171_v6 = vrot.slane %v1777_v54, 1 }
  0xb7   : > { %1844 = vmatpush1.bf16.msra.mxu1 %v1984_v51  ;;  %v361_v50 = vpop.permute.xlu0 %360  ;;  %v1185_v16 = vsel %vm365_vm1, %v1182_v46, %v1184_v47  ;;  %v579_v17 = vsel %vm365_vm1, %v574_v9, %v578_v49 }
  0xb8   : > { %1833 = vmatprep.subr.bf16.mxu1 %v2090_v1 }
  0xb9   : > { %949 = vmatmul.mubr.bf16.gmra.mrb[12].mxu1 %v396_v28  ;;  %1404 = vmatpush1.bf16.msra.mxu0 %v1984_v51  ;;  %v488_v28 = vpop.permute.xlu1 %487  ;;  %v1172_v51 = vrot.slane %v2298_v60, 1 }
  0xba   : > { %1761 = vmatprep.mubr.msk.bf16.mxu1 %vm385_vm2, %v376_v24  ;;  %1405 = vmatprep.subr.bf16.mxu0 %v2090_v1  ;;  %v1990_v24 = vld [vmem:[%s2900_s1 + $0x110] sm:$0xff]  }
  0xbb   : > { %1845 = vmatpush1.bf16.msra.mxu1 %v1985_v58  ;;  %v1159_v2 = vpop.permute.xlu0 %1158 }
  0xbc   : > { %745 = vmatmul.mubr.bf16.gmra.mrb[12].mxu0 %v557_v61  ;;  %1834 = vmatprep.subr.bf16.mxu1 %v2090_v1  ;;  %v1271_v61 = vrot.slane %v1185_v16, 2 }
  0xbd   : > { %1740 = vmatprep.mubr.msk.bf16.mxu0 %vm385_vm2, %v563_v59  ;;  %1406 = vmatpush1.bf16.msra.mxu0 %v1985_v58  ;;  %v1151_v38 = vpop.permute.xlu1 %1150  ;;  %v1988_v58 = vld [vmem:[%s2220_s20 + $0x50] ss:$0 sps:$4 sm:$0x11]  }
  0xbe   : > { %1407 = vmatprep.subr.bf16.mxu0 %v2090_v1  ;;  %v1193_v30 = vsel %vm385_vm2, %v2298_v60, %v1151_v38 }
  0xbf   : > { %1846 = vmatpush1.bf16.msra.mxu1 %v1986_v42  ;;  %v1248_v53 = vrot.slane %v1193_v30, 2  ;;  %v1155_v38 = vpop.permute.xlu0 %1154 }
  0xc0   : > { %1835 = vmatprep.subr.bf16.mxu1 %v2090_v1 }
  0xc1   : > { %957 = vmatmul.mubr.bf16.gmra.mrb[16].mxu1 %v399_v43  ;;  %1408 = vmatpush1.bf16.msra.mxu0 %v1986_v42  ;;  %v383_v43 = vrot.slane %v2330_v26, 1  ;;  %v2653_v26 = vpop.permute.xlu1 %1152 }
  0xc2   : > { %1762 = vmatprep.mubr.msk.bf16.mxu1 %vm385_vm2, %v378_v41  ;;  %1409 = vmatprep.subr.bf16.mxu0 %v2090_v1  ;;  %v575_v41 = vsel %vm365_vm1, %v570_v11, %v574_v9  ;;  %v1187_v11 = vsel %vm365_vm1, %v1184_v47, %v1186_v7 }
  0xc3   : > { %1847 = vmatpush1.bf16.msra.mxu1 %v1987_v12  ;;  %v384_v62 = vsel %vm365_vm1, %v2583_v8, %v383_v43 }
  0xc4   : > { %753 = vmatmul.mubr.bf16.gmra.mrb[16].mxu0 %v561_v13  ;;  %1836 = vmatprep.subr.bf16.mxu1 %v2090_v1 }
  0xc5   : > { %1741 = vmatprep.mubr.msk.bf16.mxu0 %vm385_vm2, %v567_v3  ;;  %1410 = vmatpush1.bf16.msra.mxu0 %v1987_v12  ;;  %v1161_v5 = vpop.permute.xlu1 %1160  ;;  %v411_v3 = vsel %vm385_vm2, %v2286_v48, %v361_v50  ;;  %v1191_v48 = vsel %vm385_vm2, %v2318_v15, %v1149_v21 }
  0xc6   : > { %1411 = vmatprep.subr.bf16.mxu0 %v2090_v1  ;;  %v1247_v34 = vrot.slane %v1191_v48, 2 }
  0xc7   : > { %1848 = vmatpush1.bf16.msra.mxu1 %v1989_v20 }
  0xc8   : > { %1837 = vmatprep.subr.bf16.mxu1 %v2090_v1 }
  0xc9   : > { %965 = vmatmul.mubr.bf16.gmra.mrb[20].mxu1 %v402_v25  ;;  %1412 = vmatpush1.bf16.msra.mxu0 %v1989_v20  ;;  %v572_v25 = vrot.slane %v503_v10, 1  ;;  %v2682_v20 = vsel %vm385_vm2, %v2340_v37, %v1159_v2  ;;  %v1163_v63 = vpop.permute.xlu1 %1162 }
  0xca   : > { %1763 = vmatprep.mubr.msk.bf16.mxu1 %vm385_vm2, %v380_v31  ;;  %1413 = vmatprep.subr.bf16.mxu0 %v2090_v1  ;;  %v1174_v31 = vrot.slane %v2321_v19, 1  ;;  %v1205_v9 = vsel %vm385_vm2, %v2357_v52, %v1163_v63  ;;  %v1195_v52 = vsel %vm385_vm2, %v2321_v19, %v2653_v26 }
  0xcb   : > { %1849 = vmatpush1.bf16.msra.mxu1 %v1990_v24  ;;  %v573_v42 = vsel %vm365_vm1, %v568_v36, %v572_v25  ;;  %v1253_v49 = vrot.slane %v1195_v52, 2 }
  0xcc   : > { %761 = vmatmul.mubr.bf16.gmra.mrb[20].mxu0 %v565_v56  ;;  %1838 = vmatprep.subr.bf16.mxu1 %v2090_v1  ;;  %v1175_v8 = vsel %vm365_vm1, %v1172_v51, %v1174_v31  ;;  %v1177_v56 = vsel %vm365_vm1, %v1174_v31, %v1176_v23 }
  0xcd   : > { %1742 = vmatprep.mubr.msk.bf16.mxu0 %vm385_vm2, %v571_v40  ;;  %1414 = vmatpush1.bf16.msra.mxu0 %v1990_v24  ;;  %v1251_v35 = vrot.slane %v1175_v8, 2  ;;  %v1265_v24 = vrot.slane %v2682_v20, 2  ;;  %v1255_v15 = vrot.slane %v1177_v56, 2  ;;  %v1254_v26 = vsel %vm1246_vm3, %v1248_v53, %v1253_v49 }
  0xce   : > { %1415 = vmatprep.subr.bf16.mxu0 %v2090_v1  ;;  %v1180_v1 = vrot.slane %v2340_v37, 1 }
  0xcf   : > { %1850 = vmatpush1.bf16.msra.mxu1 %v1991_v32  ;;  %v1256_v43 = vsel %vm1246_vm3, %v1251_v35, %v1255_v15 }
  0xd0   : > { %v2662_v57 = vsel %vm365_vm1, %v1180_v1, %v1182_v46  ;;  %v1165_v46 = vpop.permute.xlu1 %1164  ;;  %v1181_v16 = vsel %vm365_vm1, %v1178_v29, %v1180_v1 }
  0xd1   : > { %973 = vmatmul.mubr.bf16.gmra.mrb[24].mxu1 %v405_v44  ;;  %1416 = vmatpush1.bf16.msra.mxu0 %v1991_v32  ;;  %v1267_v59 = vrot.slane %v2662_v57, 2  ;;  %v506_v44 = vsel %vm385_vm2, %v1988_v58, %v488_v28  ;;  %v1275_v28 = vrot.slane %v1187_v11, 2  ;;  %v1188_v32 = vrot.slane %v2402_v39, 1 }
  0xd2   : > { %1764 = vmatprep.mubr.msk.bf16.mxu1 %vm385_vm2, %v2592_v0  ;;  %v1173_v0 = vsel %vm365_vm1, %v1171_v6, %v1172_v51  ;;  %v576_v14 = vrot.slane %v506_v44, 1  ;;  %v1249_v39 = vsel %vm1246_vm3, %v1247_v34, %v1248_v53  ;;  %v1207_v50 = vsel %vm385_vm2, %v2383_v18, %v1165_v46  ;;  %v1157_v51 = vpop.permute.xlu0 %1156 }
  0xd3   : > { %v1250_v12 = vrot.slane %v1173_v0, 2  ;;  %v1272_v13 = vsel %vm1246_vm3, %v1267_v59, %v1271_v61  ;;  %v1276_v36 = vsel %vm1246_vm3, %v1271_v61, %v1275_v28  ;;  %v1189_v21 = vsel %vm365_vm1, %v1186_v7, %v1188_v32 }
  0xd4   : > { %769 = vmatmul.mubr.bf16.gmra.mrb[24].mxu0 %v569_v4  ;;  %v1279_v54 = vrot.slane %v1189_v21, 2  ;;  %v1179_v4 = vsel %vm365_vm1, %v1176_v23, %v1178_v29  ;;  %v1277_v31 = vrot.slane %v1207_v50, 2  ;;  %v1197_v18 = vsel %vm385_vm2, %v2336_v33, %v1155_v38 }
  0xd5   : > { %1743 = vmatprep.mubr.msk.bf16.mxu0 %vm385_vm2, %v575_v41  ;;  %v1252_v27 = vsel %vm1246_vm3, %v1250_v12, %v1251_v35  ;;  %v1273_v41 = vrot.slane %v1205_v9, 2  ;;  %v1259_v10 = vrot.slane %v1179_v4, 2  ;;  %v1263_v61 = vrot.slane %v1181_v16, 2 }
  0xd6   : > { %v1280_v6 = vsel %vm1246_vm3, %v1275_v28, %v1279_v54  ;;  %v1167_v58 = vpop.permute.xlu0 %1166  ;;  %v1257_v0 = vrot.slane %v1197_v18, 2  ;;  %v1199_v1 = vsel %vm385_vm2, %v2361_v55, %v1157_v51 }
  0xd7   : > { %v1260_v19 = vsel %vm1246_vm3, %v1255_v15, %v1259_v10  ;;  %v1264_v37 = vsel %vm1246_vm3, %v1259_v10, %v1263_v61  ;;  %v1268_v7 = vsel %vm1246_vm3, %v1263_v61, %v1267_v59 }
  0xd8   : > { %v1258_v33 = vsel %vm1246_vm3, %v1253_v49, %v1257_v0 }
  0xd9   : > { %981 = vmatmul.mubr.bf16.gmra.mrb[28].mxu1 %v408_v22  ;;  %v1203_v22 = vsel %vm385_vm2, %v2348_v45, %v1161_v5  ;;  %v577_v45 = vsel %vm365_vm1, %v572_v25, %v576_v14  ;;  %v1993_v25 = vld [vmem:[%s2220_s20 + $0x58] ss:$0 sps:$4 sm:$0x33]   ;;  %v1261_v5 = vrot.slane %v1199_v1, 2  ;;  %s185_s20 = sand.u32 1, %s2064_s13  }
  0xda   : > { %1765 = vmatprep.mubr.msk.bf16.mxu1 %vm385_vm2, %v384_v62  ;;  %v1269_v40 = vrot.slane %v1203_v22, 2  ;;  %v1283_v62 = vrot.slane %v1188_v32, 2  ;;  %v1210_v8 = vsel %vm385_vm2, %v1993_v25, %v1167_v58  ;;  %s1851_s8 = smul.u32 144, %s185_s20  ;;  %s2847_s5 = scalar_lea.sflag [#allocation3], %s185_s20 }
  0xdb   : > { %v1281_v44 = vrot.slane %v1210_v8, 2  ;;  %v1262_v12 = vsel %vm1246_vm3, %v1257_v0, %v1261_v5  ;;  %v1266_v35 = vsel %vm1246_vm3, %v1261_v5, %v1265_v24 }
  0xdc   : > { %777 = vmatmul.mubr.bf16.gmra.mrb[28].mxu0 %v573_v42  ;;  %v1270_v60 = vsel %vm1246_vm3, %v1265_v24, %v1269_v40  ;;  %v1274_v47 = vsel %vm1246_vm3, %v1269_v40, %v1273_v41  ;;  %v1284_v42 = vsel %vm1246_vm3, %v1279_v54, %v1283_v62  ;;  %s2788_s11 = scalar_lea.vmem [#allocation2], %s1851_s8  ;;  %s1998_s8 = sshll.u32 %s2092_s7, 4  ;;  %s1999_s8 = int_to_ptr.vmem [resolvable:$false] %s1998_s8 }
  0xdd   : > { %1744 = vmatprep.mubr.msk.bf16.mxu0 %vm385_vm2, %v579_v17  ;;  %v1278_v17 = vsel %vm1246_vm3, %v1273_v41, %v1277_v31  ;;  %v1282_v2 = vsel %vm1246_vm3, %v1277_v31, %v1281_v44  ;;  %s1593_s16 = sshll.u32 %s2788_s11, 4  ;;  %s2000_s9 = scalar_lea.vmem %s1999_s8, 4608  ;;  %s2841_s16 = int_to_ptr.vmem [resolvable:$true] %s1593_s16 }
  0xde   : > { %s1994_s6 = scalar_lea.vmem %s2841_s16, 2304  ;;  %p2001_p4 = scmp.lt.s32.totalorder %s2841_s16, %s1999_s8 }
  0xdf   : > { %p1995_p0 = scmp.ne.s32.totalorder %s2841_s16, %s1994_s6  ;;  %p2002_p5 = scmp.lt.s32.totalorder %s2000_s9, %s1994_s6 }
  0xe1   : > { %989 = vmatmul.mubr.bf16.gmra.mrb[32].mxu1 %v411_v3  ;;  %p1996_p1 = pnand %p1995_p0, %p2166_p3  ;;  %p2003_p6 = por %p2002_p5, %p2001_p4 }
  0xe2   : > { %1819 = vmatprep.mubr.msk.bf16.mxu1 %vm385_vm2, %v1272_v13 }
  0xe3   : > { %p1997_p2 = pneg %p1996_p1 }
  0xe4   : > { %785 = vmatmul.mubr.bf16.gmra.mrb[32].mxu0 %v577_v45 }
  0xe5   : > { %1814 = vmatprep.mubr.msk.bf16.mxu0 %vm385_vm2, %v1252_v27  ;;  %p2004_p7 = pnand %p2003_p6, %p1997_p2 }
  0xe9   : > { %1466 = vmatmul.mubr.bf16.vlgmr.msra.gmra.mrb[36].mxu1 %v1270_v60 }
  0xea   : > { %1820 = vmatprep.mubr.msk.bf16.mxu1 %vm385_vm2, %v1276_v36 }
  0xec   : > { %1426 = vmatmul.mubr.bf16.vlgmr.msra.gmra.mrb[36].mxu0 %v1249_v39 }
  0xed   : > { %1815 = vmatprep.mubr.msk.bf16.mxu0 %vm385_vm2, %v1256_v43 }
  0xf1   : > { %1474 = vmatmul.mubr.bf16.gmra.mrb[40].mxu1 %v1274_v47 }
  0xf2   : > { %1821 = vmatprep.mubr.msk.bf16.mxu1 %vm385_vm2, %v1280_v6 }
  0xf4   : > { %1434 = vmatmul.mubr.bf16.gmra.mrb[40].mxu0 %v1254_v26 }
  0xf5   : > { %1816 = vmatprep.mubr.msk.bf16.mxu0 %vm385_vm2, %v1260_v19 }
  0xf9   : > { %1482 = vmatmul.mubr.bf16.gmra.mrb[44].mxu1 %v1278_v17 }
  0xfa   : > { %1822 = vmatprep.mubr.msk.bf16.mxu1 %vm385_vm2, %v1284_v42 }
  0xfc   : > { %1442 = vmatmul.mubr.bf16.gmra.mrb[44].mxu0 %v1258_v33 }
  0xfd   : > { %1817 = vmatprep.mubr.msk.bf16.mxu0 %vm385_vm2, %v1264_v37 }
 0x101   : > { %1490 = vmatmul.mubr.bf16.gmra.mrb[48].mxu1 %v1282_v2 }
 0x104   : > { %1450 = vmatmul.mubr.bf16.gmra.mrb[48].mxu0 %v1262_v12 }
 0x105   : > { %1818 = vmatprep.mubr.msk.bf16.mxu0 %vm385_vm2, %v1268_v7 }
 0x10c   : > { %1458 = vmatmul.mubr.bf16.gmra.mrb[52].mxu0 %v1266_v35 }
 0x174   : > { %v926_v3 = vpop.f32.mrb[0].mxu1 }
 0x175   : > { %v928_v55 = vpop.f32.mrb[1].mxu1 }
 0x176   : > { %v929_v13 = vpop.f32.mrb[2].mxu1 }
 0x177   : > { %v722_v14 = vpop.f32.mrb[0].mxu0  ;;  %v931_v22 = vpop.f32.mrb[3].mxu1 }
 0x178   : > { %v2747_v23 = vadd.f32 %v926_v3, %v722_v14  ;;  %v724_v57 = vpop.f32.mrb[1].mxu0 }
 0x179   : > { %v725_v11 = vpop.f32.mrb[2].mxu0 }
 0x17a   : > { %v2749_v59 = vadd.f32 %v929_v13, %v725_v11  ;;  %v727_v27 = vpop.f32.mrb[3].mxu0 }
 0x17c   : > { %v934_v48 = vpop.f32.mrb[4].mxu1 }
 0x17d   : > { %v936_v30 = vpop.f32.mrb[5].mxu1 }
 0x17e   : > { %v937_v40 = vpop.f32.mrb[6].mxu1 }
 0x17f   : > { %v730_v45 = vpop.f32.mrb[4].mxu0  ;;  %v939_v20 = vpop.f32.mrb[7].mxu1 }
 0x180   : > { %v2751_v28 = vadd.f32 %v934_v48, %v730_v45  ;;  %v732_v24 = vpop.f32.mrb[5].mxu0 }
 0x181   : > { %v733_v56 = vpop.f32.mrb[6].mxu0 }
 0x182   : > { %v2753_v63 = vadd.f32 %v937_v40, %v733_v56  ;;  %v735_v32 = vpop.f32.mrb[7].mxu0 }
 0x184   : > { %v942_v34 = vpop.f32.mrb[8].mxu1 }
 0x185   : > { %v944_v53 = vpop.f32.mrb[9].mxu1 }
 0x186   : > { %v945_v60 = vpop.f32.mrb[10].mxu1 }
 0x187   : > { %v738_v15 = vpop.f32.mrb[8].mxu0  ;;  %v947_v9 = vpop.f32.mrb[11].mxu1 }
 0x188   : > { %v2755_v36 = vadd.f32 %v942_v34, %v738_v15  ;;  %v740_v29 = vpop.f32.mrb[9].mxu0 }
 0x189   : > { %v741_v21 = vpop.f32.mrb[10].mxu0 }
 0x18a   : > { %v2757_v39 = vadd.f32 %v945_v60, %v741_v21  ;;  %v743_v38 = vpop.f32.mrb[11].mxu0 }
 0x18c   : > { %v950_v41 = vpop.f32.mrb[12].mxu1 }
 0x18d   : > { %v952_v43 = vpop.f32.mrb[13].mxu1 }
 0x18e   : > { %v953_v54 = vpop.f32.mrb[14].mxu1 }
 0x18f   : > { %v746_v4 = vpop.f32.mrb[12].mxu0  ;;  %v955_v52 = vpop.f32.mrb[15].mxu1 }
 0x190   : > { %v2759_v46 = vadd.f32 %v950_v41, %v746_v4  ;;  %v748_v47 = vpop.f32.mrb[13].mxu0  ;;  %v2781_v4 = vld [vmem:[%s2901_s2] ss:$0 sm:$0xff] }
 0x191   : > { %v749_v10 = vpop.f32.mrb[14].mxu0 }
 0x192   : > { %v2761_v49 = vadd.f32 %v953_v54, %v749_v10  ;;  %v751_v50 = vpop.f32.mrb[15].mxu0 }
 0x194   : > { %v958_v6 = vpop.f32.mrb[16].mxu1 }
 0x195   : > { %v960_v51 = vpop.f32.mrb[17].mxu1 }
 0x196   : > { %v961_v31 = vpop.f32.mrb[18].mxu1 }
 0x197   : > { %v754_v19 = vpop.f32.mrb[16].mxu0  ;;  %v963_v26 = vpop.f32.mrb[19].mxu1 }
 0x198   : > { %v2763_v25 = vadd.f32 %v958_v6, %v754_v19  ;;  %v756_v62 = vpop.f32.mrb[17].mxu0 }
 0x199   : > { %v757_v16 = vpop.f32.mrb[18].mxu0 }
 0x19a   : > { %v2765_v18 = vadd.f32 %v961_v31, %v757_v16  ;;  %v759_v58 = vpop.f32.mrb[19].mxu0 }
 0x19c   : > { %v966_v17 = vpop.f32.mrb[20].mxu1 }
 0x19d   : > { %v968_v61 = vpop.f32.mrb[21].mxu1 }
 0x19e   : > { %v969_v0 = vpop.f32.mrb[22].mxu1 }
 0x19f   : > { %v762_v8 = vpop.f32.mrb[20].mxu0  ;;  %v971_v42 = vpop.f32.mrb[23].mxu1 }
 0x1a0   : > { %v967_v44 = vadd.f32 %v966_v17, %v762_v8  ;;  %v764_v37 = vpop.f32.mrb[21].mxu0 }
 0x1a1   : > { %v765_v33 = vpop.f32.mrb[22].mxu0 }
 0x1a2   : > { %v970_v1 = vadd.f32 %v969_v0, %v765_v33  ;;  %v767_v2 = vpop.f32.mrb[23].mxu0 }
 0x1a4   : > { %v974_v5 = vpop.f32.mrb[24].mxu1 }
 0x1a5   : > { %v976_v7 = vpop.f32.mrb[25].mxu1 }
 0x1a6   : > { %v977_v12 = vpop.f32.mrb[26].mxu1 }
 0x1a7   : > { %v770_v35 = vpop.f32.mrb[24].mxu0  ;;  %v979_v3 = vpop.f32.mrb[27].mxu1 }
 0x1a8   : > { %v975_v55 = vadd.f32 %v974_v5, %v770_v35  ;;  %v772_v13 = vpop.f32.mrb[25].mxu0 }
 0x1a9   : > { %v773_v14 = vpop.f32.mrb[26].mxu0 }
 0x1aa   : > { %v978_v22 = vadd.f32 %v977_v12, %v773_v14  ;;  %v775_v57 = vpop.f32.mrb[27].mxu0 }
 0x1ac   : > { %v982_v11 = vpop.f32.mrb[28].mxu1 }
 0x1ad   : > { %v984_v27 = vpop.f32.mrb[29].mxu1 }
 0x1ae   : > { %v985_v48 = vpop.f32.mrb[30].mxu1 }
 0x1af   : > { %v778_v30 = vpop.f32.mrb[28].mxu0  ;;  %v987_v40 = vpop.f32.mrb[31].mxu1 }
 0x1b0   : > { %v2767_v45 = vadd.f32 %v982_v11, %v778_v30  ;;  %v780_v20 = vpop.f32.mrb[29].mxu0 }
 0x1b1   : > { %v781_v24 = vpop.f32.mrb[30].mxu0 }
 0x1b2   : > { %v2769_v56 = vadd.f32 %v985_v48, %v781_v24  ;;  %v783_v32 = vpop.f32.mrb[31].mxu0 }
 0x1b4   : > { %v990_v34 = vpop.f32.mrb[32].mxu1 }
 0x1b5   : > { %v992_v53 = vpop.f32.mrb[33].mxu1 }
 0x1b6   : > { %v993_v60 = vpop.f32.mrb[34].mxu1 }
 0x1b7   : > { %v786_v15 = vpop.f32.mrb[32].mxu0  ;;  %v995_v9 = vpop.f32.mrb[35].mxu1 }
 0x1b8   : > { %v2771_v29 = vadd.f32 %v990_v34, %v786_v15  ;;  %v788_v21 = vpop.f32.mrb[33].mxu0 }
 0x1b9   : > { %v789_v38 = vpop.f32.mrb[34].mxu0 }
 0x1ba   : > { %v2774_v41 = vadd.f32 %v993_v60, %v789_v38  ;;  %v791_v43 = vpop.f32.mrb[35].mxu0 }
 0x1bc   : > { %v1467_v54 = vpop.f32.mrb[36].mxu1 }
 0x1bd   : > { %v1508_v52 = vadd.f32 %v1467_v54, %v967_v44  ;;  %v1469_v47 = vpop.f32.mrb[37].mxu1 }
 0x1be   : > { %v1470_v10 = vpop.f32.mrb[38].mxu1 }
 0x1bf   : > { %v1533_v50 = vadd.f32 %v2781_v4, %v1508_v52  ;;  %v1509_v6 = vadd.f32 %v1470_v10, %v970_v1  ;;  %v1427_v51 = vpop.f32.mrb[36].mxu0  ;;  %v1472_v31 = vpop.f32.mrb[39].mxu1 }
 0x1c0   : > { %v1498_v19 = vadd.f32 %v1427_v51, %v2747_v23  ;;  %v1429_v26 = vpop.f32.mrb[37].mxu0 }
 0x1c1   : > { %v1551_v62 = vmax.f32 %v1533_v50, 0.0  ;;  %v1534_v16 = vadd.f32 %v2781_v4, %v1509_v6  ;;  %v1430_v58 = vpop.f32.mrb[38].mxu0 }
 0x1c2   : > { %v1523_v17 = vadd.f32 %v2781_v4, %v1498_v19  ;;  %v1499_v61 = vadd.f32 %v1430_v58, %v2749_v59  ;;  %v1432_v0 = vpop.f32.mrb[39].mxu0 }
 0x1c3   : > { %1569 = vst [vmem:[%s2788_s11 + $0x50] sm:$0xff] %v1551_v62  ;;  %v1552_v8 = vmax.f32 %v1534_v16, 0.0 }
 0x1c4   : > { %v1541_v42 = vmax.f32 %v1523_v17, 0.0  ;;  %v1524_v23 = vadd.f32 %v2781_v4, %v1499_v61  ;;  %v1475_v44 = vpop.f32.mrb[40].mxu1 }
 0x1c5   : > { %1570 = vst [vmem:[%s2788_s11 + $0x58] sm:$0xff] %v1552_v8  ;;  %v1510_v37 = vadd.f32 %v1475_v44, %v975_v55  ;;  %v1477_v33 = vpop.f32.mrb[41].mxu1 }
 0x1c6   : > { %1559 = vst [vmem:[%s2788_s11] sm:$0xff] %v1541_v42  ;;  %v1542_v1 = vmax.f32 %v1524_v23, 0.0  ;;  %v1478_v59 = vpop.f32.mrb[42].mxu1 }
 0x1c7   : > { %v1535_v2 = vadd.f32 %v2781_v4, %v1510_v37  ;;  %v1511_v5 = vadd.f32 %v1478_v59, %v978_v22  ;;  %v1435_v7 = vpop.f32.mrb[40].mxu0  ;;  %v1480_v12 = vpop.f32.mrb[43].mxu1 }
 0x1c8   : > { %1560 = vst [vmem:[%s2788_s11 + $0x8] sm:$0xff] %v1542_v1  ;;  %v1500_v35 = vadd.f32 %v1435_v7, %v2751_v28  ;;  %v1437_v3 = vpop.f32.mrb[41].mxu0 }
 0x1c9   : > { %v1553_v13 = vmax.f32 %v1535_v2, 0.0  ;;  %v1536_v14 = vadd.f32 %v2781_v4, %v1511_v5  ;;  %v1438_v55 = vpop.f32.mrb[42].mxu0 }
 0x1ca   : > { %v1525_v57 = vadd.f32 %v2781_v4, %v1500_v35  ;;  %v1501_v11 = vadd.f32 %v1438_v55, %v2753_v63  ;;  %v1440_v27 = vpop.f32.mrb[43].mxu0 }
 0x1cb   : > { %1571 = vst [vmem:[%s2788_s11 + $0x60] sm:$0xff] %v1553_v13  ;;  %v1554_v22 = vmax.f32 %v1536_v14, 0.0 }
 0x1cc   : > { %v1543_v48 = vmax.f32 %v1525_v57, 0.0  ;;  %v1526_v30 = vadd.f32 %v2781_v4, %v1501_v11  ;;  %v1483_v40 = vpop.f32.mrb[44].mxu1 }
 0x1cd   : > { %1572 = vst [vmem:[%s2788_s11 + $0x68] sm:$0xff] %v1554_v22  ;;  %v1512_v28 = vadd.f32 %v1483_v40, %v2767_v45  ;;  %v1485_v20 = vpop.f32.mrb[45].mxu1 }
 0x1ce   : > { %1561 = vst [vmem:[%s2788_s11 + $0x10] sm:$0xff] %v1543_v48  ;;  %v1544_v24 = vmax.f32 %v1526_v30, 0.0  ;;  %v1486_v32 = vpop.f32.mrb[46].mxu1 }
 0x1cf   : > { %v1537_v34 = vadd.f32 %v2781_v4, %v1512_v28  ;;  %v1513_v63 = vadd.f32 %v1486_v32, %v2769_v56  ;;  %v1443_v53 = vpop.f32.mrb[44].mxu0  ;;  %v1488_v60 = vpop.f32.mrb[47].mxu1 }
 0x1d0   : > { %1562 = vst [vmem:[%s2788_s11 + $0x18] sm:$0xff] %v1544_v24  ;;  %v1502_v15 = vadd.f32 %v1443_v53, %v2755_v36  ;;  %v1445_v9 = vpop.f32.mrb[45].mxu0 }
 0x1d1   : > { %v1555_v21 = vmax.f32 %v1537_v34, 0.0  ;;  %v1538_v45 = vadd.f32 %v2781_v4, %v1513_v63  ;;  %v1446_v38 = vpop.f32.mrb[46].mxu0 }
 0x1d2   : > { %v1527_v43 = vadd.f32 %v2781_v4, %v1502_v15  ;;  %v1503_v54 = vadd.f32 %v1446_v38, %v2757_v39  ;;  %v1448_v52 = vpop.f32.mrb[47].mxu0 }
 0x1d3   : > { %1573 = vst [vmem:[%s2788_s11 + $0x70] sm:$0xff] %v1555_v21  ;;  %v1556_v56 = vmax.f32 %v1538_v45, 0.0 }
 0x1d4   : > { %v1545_v47 = vmax.f32 %v1527_v43, 0.0  ;;  %v1528_v10 = vadd.f32 %v2781_v4, %v1503_v54  ;;  %v1491_v50 = vpop.f32.mrb[48].mxu1 }
 0x1d5   : > { %1574 = vst [vmem:[%s2788_s11 + $0x78] sm:$0xff] %v1556_v56  ;;  %v1514_v36 = vadd.f32 %v1491_v50, %v2771_v29  ;;  %v1493_v6 = vpop.f32.mrb[49].mxu1 }
 0x1d6   : > { %1563 = vst [vmem:[%s2788_s11 + $0x20] sm:$0xff] %v1545_v47  ;;  %v1546_v51 = vmax.f32 %v1528_v10, 0.0  ;;  %v1494_v31 = vpop.f32.mrb[50].mxu1 }
 0x1d7   : > { %v1539_v19 = vadd.f32 %v2781_v4, %v1514_v36  ;;  %v1515_v39 = vadd.f32 %v1494_v31, %v2774_v41  ;;  %v1451_v26 = vpop.f32.mrb[48].mxu0  ;;  %v1496_v62 = vpop.f32.mrb[51].mxu1 }
 0x1d8   : > { %1564 = vst [vmem:[%s2788_s11 + $0x28] sm:$0xff] %v1546_v51  ;;  %v1504_v16 = vadd.f32 %v1451_v26, %v2759_v46  ;;  %v1453_v58 = vpop.f32.mrb[49].mxu0 }
 0x1d9   : > { %v1557_v29 = vmax.f32 %v1539_v19, 0.0  ;;  %v1540_v17 = vadd.f32 %v2781_v4, %v1515_v39  ;;  %v1454_v61 = vpop.f32.mrb[50].mxu0 }
 0x1da   : > { %v1529_v0 = vadd.f32 %v2781_v4, %v1504_v16  ;;  %v1505_v8 = vadd.f32 %v1454_v61, %v2761_v49  ;;  %v1456_v42 = vpop.f32.mrb[51].mxu0 }
 0x1db   : > { %1575 = vst [vmem:[%s2788_s11 + $0x80] sm:$0xff] %v1557_v29  ;;  %v1558_v41 = vmax.f32 %v1540_v17, 0.0 }
 0x1dc   : > { %v1547_v23 = vmax.f32 %v1529_v0, 0.0  ;;  %v1530_v44 = vadd.f32 %v2781_v4, %v1505_v8 }
 0x1dd   : > { %1576 = vst [vmem:[%s2788_s11 + $0x88] sm:$0xff] %v1558_v41 }
 0x1de   : > { %1565 = vst [vmem:[%s2788_s11 + $0x30] sm:$0xff] %v1547_v23  ;;  %v1548_v46 = vmax.f32 %v1530_v44, 0.0 }
 0x1df   : > { %v1459_v37 = vpop.f32.mrb[52].mxu0 }
 0x1e0   : > { %1566 = vst [vmem:[%s2788_s11 + $0x38] sm:$0xff] %v1548_v46  ;;  %v1506_v49 = vadd.f32 %v1459_v37, %v2763_v25  ;;  %v1461_v33 = vpop.f32.mrb[53].mxu0 }
 0x1e1   : > { %v1462_v1 = vpop.f32.mrb[54].mxu0 }
 0x1e2   : > { %v1531_v59 = vadd.f32 %v2781_v4, %v1506_v49  ;;  %v1507_v2 = vadd.f32 %v1462_v1, %v2765_v18  ;;  %v1464_v5 = vpop.f32.mrb[55].mxu0 }
 0x1e4   : > { %v1549_v7 = vmax.f32 %v1531_v59, 0.0  ;;  %v1532_v12 = vadd.f32 %v2781_v4, %v1507_v2 }
 0x1e6   : > { %1567 = vst [vmem:[%s2788_s11 + $0x40] sm:$0xff] %v1549_v7  ;;  %v1550_v25 = vmax.f32 %v1532_v12, 0.0 }
 0x1e8   : > { %1568 = vst [vmem:[%s2788_s11 + $0x48] sm:$0xff] %v1550_v25 }
 0x1e9   : > { %2007 = shalt.err (!%p2004_p7)
}
 0x1ea   : > { %s2008_s20 = scalar_lea.hbm %s2839_s4, 2304  ;;  %s2012_s29 = scalar_lea.hbm %s2902_s3, 9216 }
 0x1eb   : > { %p2009_p9 = scmp.ne.s32.totalorder %s2839_s4, %s2008_s20  ;;  %p2013_p12 = scmp.lt.u32.totalorder %s2839_s4, %s2902_s3 }
 0x1ec   : > { %p2014_p13 = scmp.lt.u32.totalorder %s2012_s29, %s2008_s20  ;;  %p2016_p1 = scmp.lt.u32.totalorder %s2008_s20, %s2839_s4 }
 0x1ed   : > { %p2010_p10 = pnand %p2009_p9, %p2166_p3 }
 0x1ee   : > { %p2015_p0 = por %p2014_p13, %p2013_p12 }
 0x1ef   : > { %p2011_p11 = pneg %p2010_p10 }
 0x1f0   : > { %p2017_p2 = por %p2016_p1, %p2015_p0 }
 0x1f2   : > { %p2018_p4 = pnand %p2017_p2, %p2011_p11 }
 0x1f4   : > { %2021 = shalt.err (!%p2018_p4)
}
 0x1f5   : > { %s2093_s15 = smov 128   ;;  %s2094_s27 = smov 8  }
 0x1f6   : > { %1855 = dma.vmem_to_hbm [thread:$0]  (%p2166_p3), %s2841_s16, 2304, %s2839_s4, %s2847_s5, %s2093_s15, %s2093_s15, %s2094_s27  }
 0x1f7 PF: > { %p1861_p5 = scmp.ge.s32.totalorder %s2088_s19, 2  ;;  %s1608_s28 = sand.u32 1, %s2060_s12  }
 0x1f8   : > { %s1609_s6 = scalar_lea.sflag [#allocation3], %s1608_s28 }
 0x1f9   : > { %p1858_p6 = pnand %p1861_p5, %p2175_p8 }
 0x1fb   : > { %2055 = dma.done.wait (!%p1858_p6), %s1609_s6, 2304  }
 0x1fc   : > { %2057 = vsyncadd (!%p1858_p6), %s1609_s6, 4294964992  ;;  %s16_s19 = sadd.s32 1, %s2088_s19   ;;  %s2905_s12 = smov %s2064_s13 }
 0x1fd   : > { %p13_p7 = scmp.ge.s32.totalorder %s16_s19, 6   ;;  %s2906_s13 = smov %s2068_s14 }
 0x1fe   : > { %s2907_s14 = smov %s2184_s30  ;;  %s2908_s15 = smov %s2080_s17 }
 0x1ff   : > { %s2909_s16 = smov %s2084_s18  ;;  %s2910_s17 = smov %s2913_s22 }
 0x200   : > { %s2911_s18 = smov %s2917_s23  ;;  %15 = sbr.rel (!%p13_p7) target bundleno = 5 (0x5), region = 69 }
 0x207   :  { %1614 = vsyncpa [#allocation3], 1 }
 0x208   :  { %1616 = vsyncpa [#allocation3 + $0x1], 1 }

</bundles_post_ra>
